<compile_context>
chip_gen: v6e
topology: v6e:2x2x1
jax: 0.10.0
libtpu: 0.0.40
codegen_flags: <defaults>
</compile_context>

<pallas_src>
import functools

import jax
import jax.numpy as jnp
from jax.experimental import pallas as pl
from jax.experimental.pallas import tpu as pltpu

LANE = 128


def _round_up(n, m):
    return (n + m - 1) // m * m


def _cdiv(a, b):
    return -(-a // b)


def _mlp_kernel(x_ref,
                w1_ref, b1_ref,
                w2_ref, b2_ref,
                w3_ref, b3_ref,
                w4_ref, b4_ref,
                o_ref):
    hi = jax.lax.Precision.HIGHEST
    x = x_ref[...]

    # linear1 + ReLU (clamp(min=0))
    h = jnp.dot(x, w1_ref[...], preferred_element_type=jnp.float32,
                precision=hi) + b1_ref[...]
    h = jnp.maximum(h, 0.0)
    # linear2 + ReLU
    h = jnp.dot(h, w2_ref[...], preferred_element_type=jnp.float32,
                precision=hi) + b2_ref[...]
    h = jnp.maximum(h, 0.0)
    # linear3 + ReLU
    h = jnp.dot(h, w3_ref[...], preferred_element_type=jnp.float32,
                precision=hi) + b3_ref[...]
    h = jnp.maximum(h, 0.0)
    # linear4 (no activation). Full (TB, 128) MXU tile, then store only the
    # real output columns -> narrow (TB, d_out) HBM writeback.
    y = jnp.dot(h, w4_ref[...], preferred_element_type=jnp.float32,
                precision=hi) + b4_ref[...]
    o_ref[...] = y[:, :o_ref.shape[1]].astype(o_ref.dtype)


def _pad2(a, rows, cols):
    return jnp.pad(a, ((0, rows - a.shape[0]), (0, cols - a.shape[1])))


def prepare_params(raw_params):
    """Pad weights/biases once (not per forward call). raw weights: (in, out)."""
    d_in = raw_params["w1"].shape[0]
    Hp = _round_up(raw_params["w1"].shape[1], LANE)   # 50  -> 128
    Op = _round_up(raw_params["w4"].shape[1], LANE)   # 1   -> 128
    p = {
        "w1": _pad2(raw_params["w1"], d_in, Hp), "b1": _pad2(raw_params["b1"], 1, Hp),
        "w2": _pad2(raw_params["w2"], Hp, Hp),   "b2": _pad2(raw_params["b2"], 1, Hp),
        "w3": _pad2(raw_params["w3"], Hp, Hp),   "b3": _pad2(raw_params["b3"], 1, Hp),
        "w4": _pad2(raw_params["w4"], Hp, Op),   "b4": _pad2(raw_params["b4"], 1, Op),
    }
    return jax.tree_util.tree_map(lambda a: a.astype(jnp.float32), p)


def _choose_tiling(B, batch_tile):
    """Pick (TB, Bp, n_steps): >=2 (even) steps when batch allows (v7x megacore),
    tile a multiple of 8, and batch-padding waste bounded to <8 rows/step."""
    B8 = _round_up(max(B, 1), 8)
    n_steps = _cdiv(B8, batch_tile)
    if n_steps > 1 and n_steps % 2 == 1:
        n_steps += 1
    TB = _round_up(_cdiv(B8, n_steps), 8)
    Bp = n_steps * TB
    return TB, Bp, n_steps


@functools.partial(jax.jit, static_argnames=("d_out", "batch_tile"))
def four_layer_net(x, params, *, d_out=1, batch_tile=2048):
    """x: (B, D_in) float32. params: output of prepare_params (padded, (in, out))."""
    B, d_in = x.shape
    Hp = params["w1"].shape[1]
    Op = params["w4"].shape[1]

    TB, Bp, n_steps = _choose_tiling(B, batch_tile)

    # Only the batch dim of x is padded; the feature dim stays at D_in (=16).
    x_p = jnp.pad(x.astype(jnp.float32), ((0, Bp - B), (0, 0)))

    def batch_map(i):           # x / output tiles move with the batch index
        return (i, 0)

    def const_map(i):           # weights / biases stay resident in VMEM
        return (0, 0)

    in_specs = [
        pl.BlockSpec((TB, d_in), batch_map),
        pl.BlockSpec((d_in, Hp), const_map), pl.BlockSpec((1, Hp), const_map),
        pl.BlockSpec((Hp, Hp), const_map),   pl.BlockSpec((1, Hp), const_map),
        pl.BlockSpec((Hp, Hp), const_map),   pl.BlockSpec((1, Hp), const_map),
        pl.BlockSpec((Hp, Op), const_map),   pl.BlockSpec((1, Op), const_map),
    ]
    # Narrow output: last dim == full array dim (d_out), no lane padding.
    out_spec = pl.BlockSpec((TB, d_out), batch_map)

    flops = 2 * Bp * (d_in * Hp + 2 * Hp * Hp + Hp * Op)
    bytes_accessed = 4 * (Bp * d_in + d_in * Hp + 2 * Hp * Hp + Hp * Op
                          + 3 * Hp + Op + Bp * d_out)

    y_pad = pl.pallas_call(
        _mlp_kernel,
        out_shape=jax.ShapeDtypeStruct((Bp, d_out), jnp.float32),
        grid=(n_steps,),
        in_specs=in_specs,
        out_specs=out_spec,
        compiler_params=pltpu.CompilerParams(
            dimension_semantics=("parallel",)),
        cost_estimate=pl.CostEstimate(
            flops=flops, transcendentals=0, bytes_accessed=bytes_accessed),
    )(x_p,
      params["w1"], params["b1"],
      params["w2"], params["b2"],
      params["w3"], params["b3"],
      params["w4"], params["b4"])

    # Strip only batch padding; output columns are already exactly d_out wide.
    return y_pad[:B]


def init_params(key, d_in, h1, h2, h3, d_out):
    """Deterministic init mimicking torch.nn.Linear: U(-1/sqrt(fan_in), +1/sqrt(fan_in))."""
    params = {}
    dims = [(d_in, h1), (h1, h2), (h2, h3), (h3, d_out)]
    for i, (fan_in, fan_out) in enumerate(dims, start=1):
        key, kw, kb = jax.random.split(key, 3)
        bound = 1.0 / jnp.sqrt(float(fan_in))
        # stored as (in, out) == transpose of PyTorch's (out, in)
        params[f"w{i}"] = jax.random.uniform(
            kw, (fan_in, fan_out), jnp.float32, minval=-bound, maxval=bound)
        params[f"b{i}"] = jax.random.uniform(
            kb, (1, fan_out), jnp.float32, minval=-bound, maxval=bound)
    return params


if __name__ == "__main__":
    key = jax.random.PRNGKey(0)
    key, kx = jax.random.split(key)

    B, D_in = 8, 16          # small demo batch / feature count
    H1 = H2 = H3 = 50
    D_out = 1

    x = jax.random.normal(kx, (B, D_in), dtype=jnp.float32)
    raw_params = init_params(key, D_in, H1, H2, H3, D_out)
    params = prepare_params(raw_params)      # pad once, outside the hot path

    y = four_layer_net(x, params, d_out=D_out)
    jax.block_until_ready(y)

    # Pure-JAX reference (same math, outside Pallas, same HIGHEST precision).
    def ref(x, p):
        hi = jax.lax.Precision.HIGHEST
        h = jnp.maximum(jnp.dot(x, p["w1"], precision=hi) + p["b1"], 0.0)
        h = jnp.maximum(jnp.dot(h, p["w2"], precision=hi) + p["b2"], 0.0)
        h = jnp.maximum(jnp.dot(h, p["w3"], precision=hi) + p["b3"], 0.0)
        return jnp.dot(h, p["w4"], precision=hi) + p["b4"]

    y_ref = ref(x, raw_params)
    assert y.shape == (B, D_out)
    assert jnp.allclose(y, y_ref, atol=1e-5, rtol=1e-5)

    print("KERNEL_OK")
</pallas_src>

<mosaic_0001>
module attributes {stable_mosaic.version = 11 : i64} {
  func.func @_mlp_kernel(%arg0: i32, %arg1: memref<8x16xf32, #tpu.memory_space<vmem>>, %arg2: memref<16x128xf32, #tpu.memory_space<vmem>>, %arg3: memref<1x128xf32, #tpu.memory_space<vmem>>, %arg4: memref<128x128xf32, #tpu.memory_space<vmem>>, %arg5: memref<1x128xf32, #tpu.memory_space<vmem>>, %arg6: memref<128x128xf32, #tpu.memory_space<vmem>>, %arg7: memref<1x128xf32, #tpu.memory_space<vmem>>, %arg8: memref<128x128xf32, #tpu.memory_space<vmem>>, %arg9: memref<1x128xf32, #tpu.memory_space<vmem>>, %arg10: memref<8x1xf32, #tpu.memory_space<vmem>>) attributes {dimension_semantics = [#tpu.dimension_semantics<parallel>], iteration_bounds = array<i64: 1>, scalar_prefetch = 0 : i64, scratch_operands = 0 : i64, tpu.core_type = #tpu.core_type<tc>, window_params = [{transform_indices = @transform_0, window_bounds = array<i64: 8, 16>}, {pipeline_mode = #tpu.pipeline_mode<synchronous>, transform_indices = @transform_1, window_bounds = array<i64: 16, 128>}, {pipeline_mode = #tpu.pipeline_mode<synchronous>, transform_indices = @transform_2, window_bounds = array<i64: 1, 128>}, {pipeline_mode = #tpu.pipeline_mode<synchronous>, transform_indices = @transform_3, window_bounds = array<i64: 128, 128>}, {pipeline_mode = #tpu.pipeline_mode<synchronous>, transform_indices = @transform_4, window_bounds = array<i64: 1, 128>}, {pipeline_mode = #tpu.pipeline_mode<synchronous>, transform_indices = @transform_5, window_bounds = array<i64: 128, 128>}, {pipeline_mode = #tpu.pipeline_mode<synchronous>, transform_indices = @transform_6, window_bounds = array<i64: 1, 128>}, {pipeline_mode = #tpu.pipeline_mode<synchronous>, transform_indices = @transform_7, window_bounds = array<i64: 128, 128>}, {pipeline_mode = #tpu.pipeline_mode<synchronous>, transform_indices = @transform_8, window_bounds = array<i64: 1, 128>}, {transform_indices = @transform_9, window_bounds = array<i64: 8, 1>}]} {
    %c0 = arith.constant 0 : index
    %c0_0 = arith.constant 0 : index
    %0 = vector.load %arg1[%c0, %c0_0] : memref<8x16xf32, #tpu.memory_space<vmem>>, vector<8x16xf32>
    %c0_1 = arith.constant 0 : index
    %c0_2 = arith.constant 0 : index
    %1 = vector.load %arg2[%c0_1, %c0_2] : memref<16x128xf32, #tpu.memory_space<vmem>>, vector<16x128xf32>
    %cst = arith.constant dense<0.000000e+00> : vector<8x128xf32>
    %2 = tpu.matmul %0, %1, %cst {dimension_numbers = #tpu.dot_dimension_numbers<[1], [0], [0], [1], [0, 0, 1, 1], [], []>, precision = #tpu.contract_precision<fp32>} : vector<8x16xf32>, vector<16x128xf32>, vector<8x128xf32> -> vector<8x128xf32>
    %c0_3 = arith.constant 0 : index
    %c0_4 = arith.constant 0 : index
    %3 = vector.load %arg3[%c0_3, %c0_4] : memref<1x128xf32, #tpu.memory_space<vmem>>, vector<1x128xf32>
    %4 = vector.broadcast %3 : vector<1x128xf32> to vector<8x128xf32>
    %5 = arith.addf %2, %4 : vector<8x128xf32>
    %cst_5 = arith.constant 0.000000e+00 : f32
    %6 = vector.broadcast %cst_5 : f32 to vector<8x128xf32>
    %7 = arith.maximumf %5, %6 : vector<8x128xf32>
    %c0_6 = arith.constant 0 : index
    %c0_7 = arith.constant 0 : index
    %8 = vector.load %arg4[%c0_6, %c0_7] : memref<128x128xf32, #tpu.memory_space<vmem>>, vector<128x128xf32>
    %cst_8 = arith.constant dense<0.000000e+00> : vector<8x128xf32>
    %9 = tpu.matmul %7, %8, %cst_8 {dimension_numbers = #tpu.dot_dimension_numbers<[1], [0], [0], [1], [0, 0, 1, 1], [], []>, precision = #tpu.contract_precision<fp32>} : vector<8x128xf32>, vector<128x128xf32>, vector<8x128xf32> -> vector<8x128xf32>
    %c0_9 = arith.constant 0 : index
    %c0_10 = arith.constant 0 : index
    %10 = vector.load %arg5[%c0_9, %c0_10] : memref<1x128xf32, #tpu.memory_space<vmem>>, vector<1x128xf32>
    %11 = vector.broadcast %10 : vector<1x128xf32> to vector<8x128xf32>
    %12 = arith.addf %9, %11 : vector<8x128xf32>
    %cst_11 = arith.constant 0.000000e+00 : f32
    %13 = vector.broadcast %cst_11 : f32 to vector<8x128xf32>
    %14 = arith.maximumf %12, %13 : vector<8x128xf32>
    %c0_12 = arith.constant 0 : index
    %c0_13 = arith.constant 0 : index
    %15 = vector.load %arg6[%c0_12, %c0_13] : memref<128x128xf32, #tpu.memory_space<vmem>>, vector<128x128xf32>
    %cst_14 = arith.constant dense<0.000000e+00> : vector<8x128xf32>
    %16 = tpu.matmul %14, %15, %cst_14 {dimension_numbers = #tpu.dot_dimension_numbers<[1], [0], [0], [1], [0, 0, 1, 1], [], []>, precision = #tpu.contract_precision<fp32>} : vector<8x128xf32>, vector<128x128xf32>, vector<8x128xf32> -> vector<8x128xf32>
    %c0_15 = arith.constant 0 : index
    %c0_16 = arith.constant 0 : index
    %17 = vector.load %arg7[%c0_15, %c0_16] : memref<1x128xf32, #tpu.memory_space<vmem>>, vector<1x128xf32>
    %18 = vector.broadcast %17 : vector<1x128xf32> to vector<8x128xf32>
    %19 = arith.addf %16, %18 : vector<8x128xf32>
    %cst_17 = arith.constant 0.000000e+00 : f32
    %20 = vector.broadcast %cst_17 : f32 to vector<8x128xf32>
    %21 = arith.maximumf %19, %20 : vector<8x128xf32>
    %c0_18 = arith.constant 0 : index
    %c0_19 = arith.constant 0 : index
    %22 = vector.load %arg8[%c0_18, %c0_19] : memref<128x128xf32, #tpu.memory_space<vmem>>, vector<128x128xf32>
    %cst_20 = arith.constant dense<0.000000e+00> : vector<8x128xf32>
    %23 = tpu.matmul %21, %22, %cst_20 {dimension_numbers = #tpu.dot_dimension_numbers<[1], [0], [0], [1], [0, 0, 1, 1], [], []>, precision = #tpu.contract_precision<fp32>} : vector<8x128xf32>, vector<128x128xf32>, vector<8x128xf32> -> vector<8x128xf32>
    %c0_21 = arith.constant 0 : index
    %c0_22 = arith.constant 0 : index
    %24 = vector.load %arg9[%c0_21, %c0_22] : memref<1x128xf32, #tpu.memory_space<vmem>>, vector<1x128xf32>
    %25 = vector.broadcast %24 : vector<1x128xf32> to vector<8x128xf32>
    %26 = arith.addf %23, %25 : vector<8x128xf32>
    %27 = vector.extract_strided_slice %26 {offsets = [0, 0], sizes = [8, 1], strides = [1, 1]} : vector<8x128xf32> to vector<8x1xf32>
    %c0_23 = arith.constant 0 : index
    %c0_24 = arith.constant 0 : index
    %28 = vector.load %arg10[%c0_23, %c0_24] : memref<8x1xf32, #tpu.memory_space<vmem>>, vector<8x1xf32>
    tpu.vector_store %arg10[%c0_23, %c0_24], %27 {strides = array<i32>} : memref<8x1xf32, #tpu.memory_space<vmem>>, vector<8x1xf32>,
    return
  }
  func.func @transform_0(%arg0: i32) -> (i32, i32) {
    %c0_i32 = arith.constant 0 : i32
    %c0_i32_0 = arith.constant 0 : i32
    return %arg0, %c0_i32 : i32, i32
  }
  func.func @transform_1(%arg0: i32) -> (i32, i32) {
    %c0_i32 = arith.constant 0 : i32
    %c0_i32_0 = arith.constant 0 : i32
    %c0_i32_1 = arith.constant 0 : i32
    return %c0_i32, %c0_i32_0 : i32, i32
  }
  func.func @transform_2(%arg0: i32) -> (i32, i32) {
    %c0_i32 = arith.constant 0 : i32
    %c0_i32_0 = arith.constant 0 : i32
    %c0_i32_1 = arith.constant 0 : i32
    return %c0_i32, %c0_i32_0 : i32, i32
  }
  func.func @transform_3(%arg0: i32) -> (i32, i32) {
    %c0_i32 = arith.constant 0 : i32
    %c0_i32_0 = arith.constant 0 : i32
    %c0_i32_1 = arith.constant 0 : i32
    return %c0_i32, %c0_i32_0 : i32, i32
  }
  func.func @transform_4(%arg0: i32) -> (i32, i32) {
    %c0_i32 = arith.constant 0 : i32
    %c0_i32_0 = arith.constant 0 : i32
    %c0_i32_1 = arith.constant 0 : i32
    return %c0_i32, %c0_i32_0 : i32, i32
  }
  func.func @transform_5(%arg0: i32) -> (i32, i32) {
    %c0_i32 = arith.constant 0 : i32
    %c0_i32_0 = arith.constant 0 : i32
    %c0_i32_1 = arith.constant 0 : i32
    return %c0_i32, %c0_i32_0 : i32, i32
  }
  func.func @transform_6(%arg0: i32) -> (i32, i32) {
    %c0_i32 = arith.constant 0 : i32
    %c0_i32_0 = arith.constant 0 : i32
    %c0_i32_1 = arith.constant 0 : i32
    return %c0_i32, %c0_i32_0 : i32, i32
  }
  func.func @transform_7(%arg0: i32) -> (i32, i32) {
    %c0_i32 = arith.constant 0 : i32
    %c0_i32_0 = arith.constant 0 : i32
    %c0_i32_1 = arith.constant 0 : i32
    return %c0_i32, %c0_i32_0 : i32, i32
  }
  func.func @transform_8(%arg0: i32) -> (i32, i32) {
    %c0_i32 = arith.constant 0 : i32
    %c0_i32_0 = arith.constant 0 : i32
    %c0_i32_1 = arith.constant 0 : i32
    return %c0_i32, %c0_i32_0 : i32, i32
  }
  func.func @transform_9(%arg0: i32) -> (i32, i32) {
    %c0_i32 = arith.constant 0 : i32
    %c0_i32_0 = arith.constant 0 : i32
    return %arg0, %c0_i32 : i32, i32
  }
}

</mosaic_0001>

<bundles_post_ra>
// kernel: four_layer_net.1
= control target key start
LH: loop header
LB: loop body
LE: loop exit
PB: predicated region body
PF: predicated region fallthrough
CT: control target
= control target key end

     0   :  { %14 = vsyncpa [#allocation3], 0  ;;  %s4910_s0 = inlined_call_operand.hbm [shape: f32[8,16], index: 0, kind: input, shape index: {}]   ;;  %s4911_s1 = inlined_call_operand.hbm [shape: f32[16,128], index: 1, kind: input, shape index: {}]   ;;  %s4912_s2 = inlined_call_operand.vmem [shape: f32[1,128], index: 2, kind: input, shape index: {}]   ;;  %s4913_s3 = inlined_call_operand.hbm [shape: f32[128,128], index: 3, kind: input, shape index: {}]   ;;  %s4914_s4 = inlined_call_operand.vmem [shape: f32[1,128], index: 4, kind: input, shape index: {}]   ;;  %s4915_s5 = inlined_call_operand.hbm [shape: f32[128,128], index: 5, kind: input, shape index: {}]   ;;  %s4916_s6 = inlined_call_operand.vmem [shape: f32[1,128], index: 6, kind: input, shape index: {}]   ;;  %s4917_s7 = inlined_call_operand.hbm [shape: f32[128,128], index: 7, kind: input, shape index: {}]   ;;  %s4918_s8 = inlined_call_operand.vmem [shape: f32[1,128], index: 8, kind: input, shape index: {}]   ;;  %s4919_s9 = inlined_call_operand.vmem [shape: f32[8,1], index: 9, kind: output, shape index: {}]  }
   0x1   :  { %15 = vsyncpa [#allocation5], 0 }
   0x2   :  { %16 = vsyncpa [#allocation8], 0  ;;  %s3690_s30 = smov [#allocation4]  }
   0x3   :  { %s32_s10 = sshll.u32 %s3690_s30, 4  ;;  %s33_s10 = int_to_ptr.vmem [resolvable:$true] %s32_s10 }
   0x4   :  { %s3592_s11 = scalar_lea.vmem %s33_s10, 256  ;;  %p3597_p1 = scmp.lt.s32.totalorder %s33_s10, %s33_s10 }
   0x5   :  { %p3593_p0 = scmp.ne.s32.totalorder %s33_s10, %s3592_s11  ;;  %p3598_p2 = scmp.lt.s32.totalorder %s3592_s11, %s3592_s11 }
   0x7   :  { %p3599_p3 = por %p3598_p2, %p3597_p1 }
   0x9   :  { %p3600_p4 = pnand %p3599_p3, %p3593_p0 }
   0xb   :  { %3603 = shalt.err (!%p3600_p4)
}
   0xc   :  { %s3691_s12 = smov 128   ;;  %s3692_s13 = smov 8  }
   0xd   :  { %38 = dma.hbm_to_vmem [thread:$0]  %s4911_s1, 256, %s33_s10, [#allocation5], %s3691_s12, %s3691_s12, %s3692_s13  }
   0xe   :  { %s3693_s16 = smov [#allocation7]   ;;  %s3694_s18 = smov [#allocation2]  }
   0xf   :  { %s60_s17 = sshll.u32 %s3693_s16, 4  ;;  %s23_s19 = sshll.u32 %s3694_s18, 4  ;;  %s61_s17 = int_to_ptr.vmem [resolvable:$true] %s60_s17  ;;  %s24_s19 = int_to_ptr.vmem [resolvable:$true] %s23_s19 }
  0x10   :  { %s3612_s20 = scalar_lea.vmem %s61_s17, 2048  ;;  %p3617_p6 = scmp.lt.s32.totalorder %s61_s17, %s61_s17 }
  0x11   :  { %p3613_p5 = scmp.ne.s32.totalorder %s61_s17, %s3612_s20  ;;  %p3618_p7 = scmp.lt.s32.totalorder %s3612_s20, %s3612_s20 }
  0x13   :  { %p3619_p8 = por %p3618_p7, %p3617_p6 }
  0x15   :  { %p3620_p9 = pnand %p3619_p8, %p3613_p5 }
  0x17   :  { %3623 = shalt.err (!%p3620_p9)
}
  0x18   :  { %66 = dma.hbm_to_vmem [thread:$0]  %s4915_s5, 2048, %s61_s17, [#allocation8], %s3691_s12, %s3691_s12, %s3692_s13  }
  0x19   :  { %s3632_s1 = scalar_lea.vmem %s24_s19, 128  ;;  %p3637_p11 = scmp.lt.s32.totalorder %s24_s19, %s24_s19 }
  0x1a   :  { %p3633_p10 = scmp.ne.s32.totalorder %s24_s19, %s3632_s1  ;;  %p3638_p12 = scmp.lt.s32.totalorder %s3632_s1, %s3632_s1 }
  0x1c   :  { %p3639_p13 = por %p3638_p12, %p3637_p11 }
  0x1e   :  { %p3640_p0 = pnand %p3639_p13, %p3633_p10 }
  0x20   :  { %3643 = shalt.err (!%p3640_p0)
}
  0x21   :  { %26 = dma.hbm_to_vmem [thread:$0]  %s4910_s0, 128, %s24_s19, [#allocation3]  }
  0x22   :  { %s3695_s25 = smov [#allocation6]   ;;  %s3696_s27 = smov [#allocation9]  }
  0x23   :  { %s46_s26 = sshll.u32 %s3695_s25, 4  ;;  %s74_s28 = sshll.u32 %s3696_s27, 4  ;;  %s47_s26 = int_to_ptr.vmem [resolvable:$true] %s46_s26  ;;  %s75_s28 = int_to_ptr.vmem [resolvable:$true] %s74_s28 }
  0x24   :  { %s3652_s29 = scalar_lea.vmem %s47_s26, 2048  ;;  %p3657_p2 = scmp.lt.s32.totalorder %s47_s26, %s47_s26 }
  0x25   :  { %p3653_p1 = scmp.ne.s32.totalorder %s47_s26, %s3652_s29  ;;  %p3658_p3 = scmp.lt.s32.totalorder %s3652_s29, %s3652_s29 }
  0x27   :  { %p3659_p4 = por %p3658_p3, %p3657_p2 }
  0x29   :  { %p3660_p5 = pnand %p3659_p4, %p3653_p1 }
  0x2b   :  { %3663 = shalt.err (!%p3660_p5)
}
  0x2c   :  { %52 = dma.hbm_to_vmem [thread:$0]  %s4913_s3, 2048, %s47_s26, [#allocation5], %s3691_s12, %s3691_s12, %s3692_s13  }
  0x2d   :  { %s3672_s0 = scalar_lea.vmem %s75_s28, 2048  ;;  %p3677_p7 = scmp.lt.s32.totalorder %s75_s28, %s75_s28 }
  0x2e   :  { %p3673_p6 = scmp.ne.s32.totalorder %s75_s28, %s3672_s0  ;;  %p3678_p8 = scmp.lt.s32.totalorder %s3672_s0, %s3672_s0 }
  0x30   :  { %p3679_p9 = por %p3678_p8, %p3677_p7 }
  0x32   :  { %p3680_p10 = pnand %p3679_p9, %p3673_p6 }
  0x34   :  { %3683 = shalt.err (!%p3680_p10)
}
  0x35   :  { %80 = dma.hbm_to_vmem [thread:$0]  %s4917_s7, 2048, %s75_s28, [#allocation8], %s3691_s12, %s3691_s12, %s3692_s13  }
  0x36   :  { %3684 = dma.done.wait [#allocation3], 128  }
  0x37   :  { %3685 = vsyncadd [#allocation3], 4294967168 }
  0x38   :  { %3686 = dma.done.wait [#allocation5], 2304  }
  0x39   :  { %3687 = vsyncadd [#allocation5], 4294964992 }
  0x3a   :  { %3688 = dma.done.wait [#allocation8], 4096  }
  0x3b   :  { %3689 = vsyncadd [#allocation8], 4294963200  ;;  %v3697_v0 = vmov 0.0   ;;  %vm3698_vm0 = vmmov 0   ;;  %vm108_vm1 = vcmask 130048   ;;  %v100_v1 = vld [vmem:[#allocation4 + $0x8] sm:$0xff] }
  0x3c   :  { %2903 = vmatprep.subr.mxu0 %v3697_v0  ;;  %2910 = vmatprep.subr.mxu1 %v3697_v0  ;;  %v99_v2 = vld [vmem:[#allocation4] sm:$0xff]  ;;  %v98_v3 = vld [vmem:[#allocation2] sm:$0xff]  ;;  %v3782_v4 = vand.u32 4294901760, %v100_v1  ;;  %v587_v10 = vld [vmem:[#allocation6 + $0x78] sm:$0xff]  ;;  %vm2566_vm2 = vcmask 7168  }
  0x3d   :  { %2907 = vmatprep.mubr.msk.f32.mxu0 %vm3698_vm0, %v3697_v0  ;;  %2914 = vmatprep.mubr.msk.f32.mxu1 %vm3698_vm0, %v3697_v0  ;;  %v3784_v5 = vand.u32 4294901760, %v99_v2  ;;  %v110_v6 = vsel %vm108_vm1, %v98_v3, 0  ;;  %v586_v14 = vld [vmem:[#allocation6 + $0x70] sm:$0xff]  ;;  %v3795_v16 = vand.u32 4294901760, %v587_v10  ;;  %v585_v19 = vld [vmem:[#allocation6 + $0x68] sm:$0xff]  ;;  %v584_v24 = vld [vmem:[#allocation6 + $0x60] sm:$0xff] }
  0x3e   :  { %v3786_v7 = vand.u32 4294901760, %v110_v6  ;;  %2904 = vmatpush3.msra.mxu0 %v3782_v4  ;;  %v219_v8 = vsub.f32 %v100_v1, %v3782_v4  ;;  %v3797_v21 = vand.u32 4294901760, %v586_v14  ;;  %v3802_v27 = vand.u32 4294901760, %v585_v19  ;;  %v583_v28 = vld [vmem:[#allocation6 + $0x58] sm:$0xff]  ;;  %v582_v31 = vld [vmem:[#allocation6 + $0x50] sm:$0xff]  ;;  %v581_v35 = vld [vmem:[#allocation6 + $0x48] sm:$0xff] }
  0x3f   :  { %v226_v9 = vsub.f32 %v99_v2, %v3784_v5  ;;  %2905 = vmatprep.subr.mxu0 %v3697_v0  ;;  %v3800_v26 = vsub.f32 %v587_v10, %v3795_v16  ;;  %v3808_v30 = vand.u32 4294901760, %v584_v24  ;;  %v3816_v34 = vand.u32 4294901760, %v583_v28  ;;  %v580_v39 = vld [vmem:[#allocation6 + $0x40] sm:$0xff]  ;;  %v577_v10 = vld [vmem:[#allocation6 + $0x28] sm:$0xff] }
  0x40   :  { %v180_v11 = vsub.f32 %v110_v6, %v3786_v7  ;;  %2906 = vmatpush3.msra.mxu0 %v3784_v5  ;;  %v220_v12 = vand.u32 4294901760, %v219_v8  ;;  %v3806_v29 = vsub.f32 %v586_v14, %v3797_v21  ;;  %v3814_v33 = vsub.f32 %v585_v19, %v3802_v27  ;;  %v576_v14 = vld [vmem:[#allocation6 + $0x20] sm:$0xff] }
  0x41   :  { %v227_v13 = vand.u32 4294901760, %v226_v9  ;;  %2917 = vmatprep.subr.mxu0 %v3697_v0  ;;  %v689_v32 = vand.u32 4294901760, %v3800_v26  ;;  %v3824_v37 = vsub.f32 %v584_v24, %v3808_v30  ;;  %v3826_v38 = vand.u32 4294901760, %v582_v31 }
  0x42   :  { %v181_v15 = vand.u32 4294901760, %v180_v11  ;;  %v221_v17 = vsub.f32 %v219_v8, %v220_v12  ;;  %v696_v36 = vand.u32 4294901760, %v3806_v29  ;;  %v703_v41 = vand.u32 4294901760, %v3814_v33 }
  0x43   :  { %v228_v18 = vsub.f32 %v226_v9, %v227_v13  ;;  %v690_v40 = vsub.f32 %v3800_v26, %v689_v32  ;;  %v3836_v42 = vsub.f32 %v583_v28, %v3816_v34  ;;  %v3838_v43 = vand.u32 4294901760, %v581_v35 }
  0x44   :  { %v182_v20 = vsub.f32 %v180_v11, %v181_v15  ;;  %v222_v22 = vand.u32 4294901760, %v221_v17  ;;  %v697_v44 = vsub.f32 %v3806_v29, %v696_v36  ;;  %v710_v45 = vand.u32 4294901760, %v3824_v37 }
  0x45   :  { %v229_v23 = vand.u32 4294901760, %v228_v18  ;;  %v3848_v46 = vsub.f32 %v582_v31, %v3826_v38  ;;  %v3850_v47 = vand.u32 4294901760, %v580_v39  ;;  %v691_v48 = vand.u32 4294901760, %v690_v40  ;;  %v574_v31 = vld [vmem:[#allocation6 + $0x10] sm:$0xff] }
  0x46   :  { %v183_v25 = vand.u32 4294901760, %v182_v20  ;;  %2911 = vmatpush3.msra.mxu1 %v222_v22  ;;  %v704_v49 = vsub.f32 %v3814_v33, %v703_v41  ;;  %v717_v50 = vand.u32 4294901760, %v3836_v42  ;;  %v3861_v51 = vsub.f32 %v581_v35, %v3838_v43  ;;  %v575_v20 = vld [vmem:[#allocation6 + $0x18] sm:$0xff] }
  0x47   :  { %2912 = vmatprep.subr.mxu1 %v3697_v0  ;;  %v698_v52 = vand.u32 4294901760, %v697_v44  ;;  %v711_v53 = vsub.f32 %v3824_v37, %v710_v45  ;;  %v724_v54 = vand.u32 4294901760, %v3848_v46  ;;  %v3873_v55 = vsub.f32 %v580_v39, %v3850_v47 }
  0x48   :  { %2908 = vmatmul.mubr.f32.vlgmr.msra.gmra.mxu0 %v183_v25  ;;  %2913 = vmatpush3.msra.mxu1 %v229_v23  ;;  %v705_v56 = vand.u32 4294901760, %v704_v49  ;;  %v718_v57 = vsub.f32 %v3836_v42, %v717_v50  ;;  %v731_v58 = vand.u32 4294901760, %v3861_v51  ;;  %v3944_v19 = vand.u32 4294901760, %v576_v14  ;;  %v573_v49 = vld [vmem:[#allocation6 + $0x8] sm:$0xff] }
  0x49   :  { %2918 = vmatpush3.msra.mxu0 %v219_v8  ;;  %2915 = vmatmul.mubr.f32.vlgmr.msra.gmra.mxu1 %v3786_v7  ;;  %v712_v59 = vand.u32 4294901760, %v711_v53  ;;  %v725_v60 = vsub.f32 %v3848_v46, %v724_v54  ;;  %v738_v61 = vand.u32 4294901760, %v3873_v55  ;;  %v3956_v28 = vand.u32 4294901760, %v575_v20 }
  0x4a   :  { %2919 = vmatprep.subr.mxu0 %v3697_v0  ;;  %2924 = vmatprep.subr.mxu1 %v3697_v0  ;;  %v719_v62 = vand.u32 4294901760, %v718_v57  ;;  %v732_v63 = vsub.f32 %v3861_v51, %v731_v58  ;;  %v3953_v25 = vsub.f32 %v576_v14, %v3944_v19  ;;  %v3963_v44 = vand.u32 4294901760, %v574_v31 }
  0x4b   :  { %2920 = vmatpush3.msra.mxu0 %v226_v9  ;;  %2921 = vmatprep.mubr.msk.f32.mxu0 %vm3698_vm0, %v3697_v0  ;;  %v726_v1 = vand.u32 4294901760, %v725_v60  ;;  %v739_v2 = vsub.f32 %v3873_v55, %v738_v61  ;;  %v3976_v57 = vand.u32 4294901760, %v573_v49  ;;  %v572_v60 = vld [vmem:[#allocation6] sm:$0xff] }
  0x4c   :  { %2925 = vmatpush3.msra.mxu1 %v3782_v4  ;;  %2922 = vmatmul.mubr.f32.vlgmr.msra.gmra.mxu0 %v180_v11  ;;  %v733_v3 = vand.u32 4294901760, %v732_v63  ;;  %v4924_v40 = vand.u32 4294901760, %v3953_v25 }
  0x4d   :  { %2926 = vmatprep.subr.mxu1 %v3697_v0  ;;  %2931 = vmatprep.subr.mxu0 %v3697_v0 }
  0x4e   :  { %2927 = vmatpush3.msra.mxu1 %v3784_v5  ;;  %2928 = vmatprep.mubr.msk.f32.mxu1 %vm3698_vm0, %v3697_v0  ;;  %v767_v53 = vsub.f32 %v3953_v25, %v4924_v40 }
  0x4f   :  { %2932 = vmatpush3.msra.mxu0 %v220_v12  ;;  %2929 = vmatmul.mubr.f32.vlgmr.msra.gmra.mxu1 %v181_v15 }
  0x50   :  { %2933 = vmatprep.subr.mxu0 %v3697_v0  ;;  %2938 = vmatprep.subr.mxu1 %v3697_v0 }
  0x51   :  { %2934 = vmatpush3.msra.mxu0 %v227_v13  ;;  %2935 = vmatprep.mubr.msk.f32.mxu0 %vm3698_vm0, %v3697_v0  ;;  %v3933_v13 = vand.u32 4294901760, %v577_v10 }
  0x52   :  { %2939 = vmatpush3.msra.mxu1 %v3782_v4  ;;  %2936 = vmatmul.mubr.f32.vlgmr.msra.gmra.mxu0 %v3786_v7  ;;  %v740_v4 = vand.u32 4294901760, %v739_v2  ;;  %v3986_v2 = vand.u32 4294901760, %v572_v60 }
  0x53   :  { %2940 = vmatprep.subr.mxu1 %v3697_v0  ;;  %2942 = vmatprep.mubr.msk.f32.mxu1 %vm3698_vm0, %v3697_v0  ;;  %v3942_v18 = vsub.f32 %v577_v10, %v3933_v13 }
  0x54   :  { %2941 = vmatpush3.msra.mxu1 %v3784_v5  ;;  %2945 = vmatprep.subr.mxu0 %v3697_v0  ;;  %v579_v5 = vld [vmem:[#allocation6 + $0x38] sm:$0xff] }
  0x55   :  { %2943 = vmatmul.mubr.f32.vlgmr.msra.gmra.mxu1 %v3786_v7  ;;  %2980 = vmatprep.subr.mxu1 %v3697_v0  ;;  %v3920_v6 = vand.u32 4294901760, %v579_v5  ;;  %v578_v7 = vld [vmem:[#allocation6 + $0x30] sm:$0xff]  ;;  %v4925_v24 = vand.u32 4294901760, %v3942_v18 }
  0x56   :  { %2981 = vmatpush3.msra.mxu1 %v691_v48  ;;  %2946 = vmatpush3.msra.mxu0 %v3795_v16  ;;  %v3925_v9 = vand.u32 4294901760, %v578_v7  ;;  %v3967_v48 = vsub.f32 %v575_v20, %v3956_v28 }
  0x57   :  { %2982 = vmatprep.subr.mxu1 %v3697_v0  ;;  %2947 = vmatprep.subr.mxu0 %v3697_v0  ;;  %v3923_v8 = vsub.f32 %v579_v5, %v3920_v6  ;;  %v760_v39 = vsub.f32 %v3942_v18, %v4925_v24 }
  0x58   :  { %2983 = vmatpush3.msra.mxu1 %v698_v52  ;;  %2948 = vmatpush3.msra.mxu0 %v3797_v21  ;;  %v3931_v12 = vsub.f32 %v578_v7, %v3925_v9  ;;  %v3999_v7 = vsub.f32 %v572_v60, %v3986_v2 }
  0x59   :  { %2984 = vmatprep.subr.mxu1 %v3697_v0  ;;  %2949 = vmatprep.subr.mxu0 %v3697_v0  ;;  %v745_v11 = vand.u32 4294901760, %v3923_v8  ;;  %v761_v52 = vand.u32 4294901760, %v760_v39 }
  0x5a   :  { %2985 = vmatpush3.msra.mxu1 %v705_v56  ;;  %2950 = vmatpush3.msra.mxu0 %v3802_v27  ;;  %v752_v17 = vand.u32 4294901760, %v3931_v12  ;;  %v3974_v56 = vsub.f32 %v574_v31, %v3963_v44  ;;  %v4920_v20 = vand.u32 4294901760, %v3999_v7 }
  0x5b   :  { %2986 = vmatprep.subr.mxu1 %v3697_v0  ;;  %2951 = vmatprep.subr.mxu0 %v3697_v0  ;;  %v746_v15 = vsub.f32 %v3923_v8, %v745_v11 }
  0x5c   :  { %2987 = vmatpush3.msra.mxu1 %v712_v59  ;;  %2952 = vmatpush3.msra.mxu0 %v3808_v30  ;;  %v753_v23 = vsub.f32 %v3931_v12, %v752_v17  ;;  %v4923_v59 = vand.u32 4294901760, %v3967_v48  ;;  %v4922_v63 = vand.u32 4294901760, %v3974_v56 }
  0x5d   :  { %2988 = vmatprep.subr.mxu1 %v3697_v0  ;;  %2953 = vmatprep.subr.mxu0 %v3697_v0  ;;  %v747_v22 = vand.u32 4294901760, %v746_v15 }
  0x5e   :  { %2989 = vmatpush3.msra.mxu1 %v719_v62  ;;  %2954 = vmatpush3.msra.mxu0 %v3816_v34  ;;  %v754_v35 = vand.u32 4294901760, %v753_v23  ;;  %v768_v62 = vand.u32 4294901760, %v767_v53  ;;  %v795_v23 = vsub.f32 %v3999_v7, %v4920_v20 }
  0x5f   :  { %2990 = vmatprep.subr.mxu1 %v3697_v0  ;;  %2955 = vmatprep.subr.mxu0 %v3697_v0 }
  0x60   :  { %2991 = vmatpush3.msra.mxu1 %v726_v1  ;;  %2956 = vmatpush3.msra.mxu0 %v3826_v38  ;;  %v3984_v1 = vsub.f32 %v573_v49, %v3976_v57  ;;  %v796_v31 = vand.u32 4294901760, %v795_v23 }
  0x61   :  { %2992 = vmatprep.subr.mxu1 %v3697_v0  ;;  %2957 = vmatprep.subr.mxu0 %v3697_v0 }
  0x62   :  { %2993 = vmatpush3.msra.mxu1 %v733_v3  ;;  %2958 = vmatpush3.msra.mxu0 %v3838_v43  ;;  %v774_v3 = vsub.f32 %v3967_v48, %v4923_v59  ;;  %v4921_v5 = vand.u32 4294901760, %v3984_v1 }
  0x63   :  { %2994 = vmatprep.subr.mxu1 %v3697_v0  ;;  %2959 = vmatprep.subr.mxu0 %v3697_v0 }
  0x64   :  { %2995 = vmatpush3.msra.mxu1 %v740_v4  ;;  %2960 = vmatpush3.msra.mxu0 %v3850_v47  ;;  %v781_v4 = vsub.f32 %v3974_v56, %v4922_v63  ;;  %v775_v10 = vand.u32 4294901760, %v774_v3  ;;  %v788_v15 = vsub.f32 %v3984_v1, %v4921_v5 }
  0x65   :  { %2996 = vmatprep.subr.mxu1 %v3697_v0  ;;  %2961 = vmatprep.subr.mxu0 %v3697_v0 }
  0x66   :  { %3012 = vmatprep.mubr.msk.f32.mxu1 %vm3698_vm0, %v3697_v0  ;;  %2977 = vmatprep.mubr.msk.f32.mxu0 %vm3698_vm0, %v3697_v0  ;;  %v782_v14 = vand.u32 4294901760, %v781_v4 }
  0x67   :  { %2962 = vmatpush3.msra.mxu0 %v3920_v6  ;;  %2997 = vmatpush3.msra.mxu1 %v747_v22  ;;  %v789_v22 = vand.u32 4294901760, %v788_v15 }
  0x68   :  { %2963 = vmatprep.subr.mxu0 %v3697_v0  ;;  %2998 = vmatprep.subr.mxu1 %v3697_v0 }
  0x69   :  { %2964 = vmatpush3.msra.mxu0 %v3925_v9  ;;  %2999 = vmatpush3.msra.mxu1 %v754_v35  ;;  %v2575_v35 = vld [vmem:[%s4912_s2] ss:$0 sm:$0xff] }
  0x6a   :  { %2965 = vmatprep.subr.mxu0 %v3697_v0  ;;  %3000 = vmatprep.subr.mxu1 %v3697_v0 }
  0x6b   :  { %2966 = vmatpush3.msra.mxu0 %v3933_v13  ;;  %3001 = vmatpush3.msra.mxu1 %v761_v52 }
  0x6c   :  { %2967 = vmatprep.subr.mxu0 %v3697_v0  ;;  %3002 = vmatprep.subr.mxu1 %v3697_v0 }
  0x6d   :  { %2968 = vmatpush3.msra.mxu0 %v3944_v19  ;;  %3003 = vmatpush3.msra.mxu1 %v768_v62 }
  0x6e   :  { %2969 = vmatprep.subr.mxu0 %v3697_v0  ;;  %3004 = vmatprep.subr.mxu1 %v3697_v0 }
  0x6f   :  { %2970 = vmatpush3.msra.mxu0 %v3956_v28  ;;  %3005 = vmatpush3.msra.mxu1 %v775_v10 }
  0x70   :  { %2971 = vmatprep.subr.mxu0 %v3697_v0  ;;  %3006 = vmatprep.subr.mxu1 %v3697_v0 }
  0x71   :  { %2972 = vmatpush3.msra.mxu0 %v3963_v44  ;;  %3007 = vmatpush3.msra.mxu1 %v782_v14 }
  0x72   :  { %2973 = vmatprep.subr.mxu0 %v3697_v0  ;;  %3008 = vmatprep.subr.mxu1 %v3697_v0 }
  0x73   :  { %2974 = vmatpush3.msra.mxu0 %v3976_v57  ;;  %3009 = vmatpush3.msra.mxu1 %v789_v22 }
  0x74   :  { %2975 = vmatprep.subr.mxu0 %v3697_v0  ;;  %3010 = vmatprep.subr.mxu1 %v3697_v0 }
  0x75   :  { %2976 = vmatpush3.msra.mxu0 %v3986_v2  ;;  %3011 = vmatpush3.msra.mxu1 %v796_v31 }
  0x76   :  { %3015 = vmatprep.subr.mxu0 %v3697_v0  ;;  %3050 = vmatprep.subr.mxu1 %v3697_v0 }
 0x108   :  { %v185_v39 = vpop.f32.mrf.mxu0 }
 0x109   :  { %v186_v49 = vadd.f32 %v2575_v35, %v185_v39  ;;  %v266_v53 = vpop.f32.mrf.mxu1 }
 0x10a   :  { %v2909_v52 = vpop.f32.mrf.mxu0 }
 0x10b   :  { %v267_v60 = vadd.f32 %v266_v53, %v186_v49  ;;  %v2916_v62 = vpop.f32.mrf.mxu1 }
 0x10c   :  { %v342_v3 = vpop.f32.mrf.mxu0  ;;  %v1244_v62 = vld [vmem:[#allocation7 + $0x38] sm:$0xff] }
 0x10d   :  { %v343_v4 = vadd.f32 %v342_v3, %v267_v60 }
 0x10e   :  { %v2923_v10 = vpop.f32.mrf.mxu0 }
 0x10f   :  { %v417_v14 = vpop.f32.mrf.mxu1  ;;  %v4275_v10 = vand.u32 4294901760, %v1244_v62 }
 0x110   :  { %v418_v15 = vadd.f32 %v417_v14, %v343_v4  ;;  %v1243_v14 = vld [vmem:[#allocation7 + $0x30] sm:$0xff] }
 0x111   :  { %v2930_v22 = vpop.f32.mrf.mxu1 }
 0x112   :  { %v494_v23 = vpop.f32.mrf.mxu0  ;;  %v4281_v22 = vsub.f32 %v1244_v62, %v4275_v10 }
 0x113   :  { %v495_v31 = vadd.f32 %v494_v23, %v418_v15  ;;  %v4283_v23 = vand.u32 4294901760, %v1243_v14 }
 0x114   :  { %v2937_v20 = vpop.f32.mrf.mxu0 }
 0x115   :  { %v567_v5 = vpop.f32.mrf.mxu1 }
 0x116   :  { %v568_v63 = vadd.f32 %v567_v5, %v495_v31  ;;  %v1242_v31 = vld [vmem:[#allocation7 + $0x28] sm:$0xff] }
 0x117   :  { %v2944_v59 = vpop.f32.mrf.mxu1 }
 0x118   :  { %v571_v40 = vmax.f32 %v568_v63, 0.0 }
 0x11a   :  { %v4019_v24 = vand.u32 4294901760, %v571_v40 }
 0x11c   :  { %v4022_v35 = vsub.f32 %v571_v40, %v4019_v24  ;;  %3013 = vmatmul.mubr.f32.vlgmr.msra.gmra.mxu1 %v4019_v24 }
 0x11d   :  { %3051 = vmatpush3.msra.mxu1 %v3795_v16  ;;  %3082 = vmatprep.mubr.msk.f32.mxu1 %vm3698_vm0, %v3697_v0 }
 0x11e   :  { %v678_v39 = vand.u32 4294901760, %v4022_v35  ;;  %3052 = vmatprep.subr.mxu1 %v3697_v0 }
 0x11f   :  { %3053 = vmatpush3.msra.mxu1 %v3797_v21 }
 0x120   :  { %v679_v59 = vsub.f32 %v4022_v35, %v678_v39  ;;  %3054 = vmatprep.subr.mxu1 %v3697_v0 }
 0x121   :  { %3055 = vmatpush3.msra.mxu1 %v3802_v27 }
 0x122   :  { %3056 = vmatprep.subr.mxu1 %v3697_v0  ;;  %v680_v40 = vand.u32 4294901760, %v679_v59  ;;  %v4290_v59 = vsub.f32 %v1243_v14, %v4283_v23 }
 0x123   :  { %3057 = vmatpush3.msra.mxu1 %v3808_v30 }
 0x124   :  { %3058 = vmatprep.subr.mxu1 %v3697_v0  ;;  %2978 = vmatmul.mubr.f32.vlgmr.msra.gmra.mxu0 %v680_v40  ;;  %v4292_v40 = vand.u32 4294901760, %v1242_v31 }
 0x125   :  { %3016 = vmatpush3.msra.mxu0 %v3800_v26  ;;  %3059 = vmatpush3.msra.mxu1 %v3816_v34  ;;  %v4936_v26 = vand.u32 4294901760, %v3967_v48 }
 0x126   :  { %3017 = vmatprep.subr.mxu0 %v3697_v0  ;;  %3060 = vmatprep.subr.mxu1 %v3697_v0 }
 0x127   :  { %3018 = vmatpush3.msra.mxu0 %v3806_v29  ;;  %3061 = vmatpush3.msra.mxu1 %v3826_v38  ;;  %v4938_v29 = vand.u32 4294901760, %v3984_v1 }
 0x128   :  { %3019 = vmatprep.subr.mxu0 %v3697_v0  ;;  %3062 = vmatprep.subr.mxu1 %v3697_v0 }
 0x129   :  { %3020 = vmatpush3.msra.mxu0 %v3814_v33  ;;  %3063 = vmatpush3.msra.mxu1 %v3838_v43 }
 0x12a   :  { %3021 = vmatprep.subr.mxu0 %v3697_v0  ;;  %3064 = vmatprep.subr.mxu1 %v3697_v0 }
 0x12b   :  { %3022 = vmatpush3.msra.mxu0 %v3824_v37  ;;  %3065 = vmatpush3.msra.mxu1 %v3850_v47 }
 0x12c   :  { %3023 = vmatprep.subr.mxu0 %v3697_v0  ;;  %3066 = vmatprep.subr.mxu1 %v3697_v0 }
 0x12d   :  { %3024 = vmatpush3.msra.mxu0 %v3836_v42  ;;  %3067 = vmatpush3.msra.mxu1 %v3920_v6  ;;  %v1248_v42 = vld [vmem:[#allocation7 + $0x58] sm:$0xff] }
 0x12e   :  { %3025 = vmatprep.subr.mxu0 %v3697_v0  ;;  %3068 = vmatprep.subr.mxu1 %v3697_v0 }
 0x12f   :  { %3026 = vmatpush3.msra.mxu0 %v3848_v46  ;;  %3069 = vmatpush3.msra.mxu1 %v3925_v9  ;;  %v4198_v46 = vand.u32 4294901760, %v1248_v42 }
 0x130   :  { %3027 = vmatprep.subr.mxu0 %v3697_v0  ;;  %3070 = vmatprep.subr.mxu1 %v3697_v0 }
 0x131   :  { %3028 = vmatpush3.msra.mxu0 %v3861_v51  ;;  %3071 = vmatpush3.msra.mxu1 %v3933_v13  ;;  %v1245_v51 = vld [vmem:[#allocation7 + $0x40] sm:$0xff] }
 0x132   :  { %3029 = vmatprep.subr.mxu0 %v3697_v0  ;;  %3072 = vmatprep.subr.mxu1 %v3697_v0 }
 0x133   :  { %3030 = vmatpush3.msra.mxu0 %v3873_v55  ;;  %3073 = vmatpush3.msra.mxu1 %v3944_v19 }
 0x134   :  { %3031 = vmatprep.subr.mxu0 %v3697_v0  ;;  %3074 = vmatprep.subr.mxu1 %v3697_v0 }
 0x135   :  { %3032 = vmatpush3.msra.mxu0 %v3923_v8  ;;  %3075 = vmatpush3.msra.mxu1 %v3956_v28 }
 0x136   :  { %3033 = vmatprep.subr.mxu0 %v3697_v0  ;;  %3076 = vmatprep.subr.mxu1 %v3697_v0 }
 0x137   :  { %3034 = vmatpush3.msra.mxu0 %v3931_v12  ;;  %3077 = vmatpush3.msra.mxu1 %v3963_v44 }
 0x138   :  { %3035 = vmatprep.subr.mxu0 %v3697_v0  ;;  %3078 = vmatprep.subr.mxu1 %v3697_v0 }
 0x139   :  { %3036 = vmatpush3.msra.mxu0 %v3942_v18  ;;  %3079 = vmatpush3.msra.mxu1 %v3976_v57 }
 0x13a   :  { %3037 = vmatprep.subr.mxu0 %v3697_v0  ;;  %3080 = vmatprep.subr.mxu1 %v3697_v0 }
 0x13b   :  { %3038 = vmatpush3.msra.mxu0 %v3953_v25  ;;  %3081 = vmatpush3.msra.mxu1 %v3986_v2 }
 0x13c   :  { %3039 = vmatprep.subr.mxu0 %v3697_v0  ;;  %3083 = vmatmul.mubr.f32.vlgmr.msra.gmra.mxu1 %v678_v39  ;;  %v1410_v39 = vand.u32 4294901760, %v4281_v22 }
 0x13d   :  { %3120 = vmatprep.subr.mxu1 %v3697_v0  ;;  %3040 = vmatpush3.msra.mxu0 %v3967_v48 }
 0x13e   :  { %3121 = vmatpush3.msra.mxu1 %v3795_v16  ;;  %3041 = vmatprep.subr.mxu0 %v3697_v0  ;;  %v4934_v16 = vand.u32 4294901760, %v3942_v18 }
 0x13f   :  { %3122 = vmatprep.subr.mxu1 %v3697_v0  ;;  %3042 = vmatpush3.msra.mxu0 %v3974_v56 }
 0x140   :  { %3123 = vmatpush3.msra.mxu1 %v3797_v21  ;;  %3043 = vmatprep.subr.mxu0 %v3697_v0  ;;  %v4935_v21 = vand.u32 4294901760, %v3953_v25 }
 0x141   :  { %3124 = vmatprep.subr.mxu1 %v3697_v0  ;;  %3044 = vmatpush3.msra.mxu0 %v3984_v1 }
 0x142   :  { %3125 = vmatpush3.msra.mxu1 %v3802_v27  ;;  %3045 = vmatprep.subr.mxu0 %v3697_v0  ;;  %v4937_v27 = vand.u32 4294901760, %v3974_v56 }
 0x143   :  { %3126 = vmatprep.subr.mxu1 %v3697_v0  ;;  %3046 = vmatpush3.msra.mxu0 %v3999_v7 }
 0x144   :  { %3047 = vmatprep.mubr.msk.f32.mxu0 %vm3698_vm0, %v3697_v0  ;;  %3127 = vmatpush3.msra.mxu1 %v3808_v30  ;;  %v4939_v30 = vand.u32 4294901760, %v3999_v7 }
 0x145   :  { %3048 = vmatmul.mubr.f32.vlgmr.msra.gmra.mxu0 %v4022_v35  ;;  %3085 = vmatprep.subr.mxu0 %v3697_v0 }
 0x146   :  { %3128 = vmatprep.subr.mxu1 %v3697_v0  ;;  %3086 = vmatpush3.msra.mxu0 %v689_v32  ;;  %v1252_v32 = vld [vmem:[#allocation7 + $0x78] sm:$0xff] }
 0x147   :  { %3129 = vmatpush3.msra.mxu1 %v3816_v34  ;;  %3087 = vmatprep.subr.mxu0 %v3697_v0  ;;  %v4186_v33 = vand.u32 4294901760, %v1252_v32  ;;  %v1251_v34 = vld [vmem:[#allocation7 + $0x70] sm:$0xff] }
 0x148   :  { %3130 = vmatprep.subr.mxu1 %v3697_v0  ;;  %3088 = vmatpush3.msra.mxu0 %v696_v36  ;;  %v4191_v37 = vand.u32 4294901760, %v1251_v34 }
 0x149   :  { %3131 = vmatpush3.msra.mxu1 %v3826_v38  ;;  %3089 = vmatprep.subr.mxu0 %v3697_v0  ;;  %v4189_v36 = vsub.f32 %v1252_v32, %v4186_v33  ;;  %v1250_v38 = vld [vmem:[#allocation7 + $0x68] sm:$0xff] }
 0x14a   :  { %3132 = vmatprep.subr.mxu1 %v3697_v0  ;;  %3090 = vmatpush3.msra.mxu0 %v703_v41  ;;  %v1249_v41 = vld [vmem:[#allocation7 + $0x60] sm:$0xff]  ;;  %v4203_v55 = vsub.f32 %v1251_v34, %v4191_v37 }
 0x14b   :  { %3133 = vmatpush3.msra.mxu1 %v3838_v43  ;;  %3091 = vmatprep.subr.mxu0 %v3697_v0  ;;  %v4194_v43 = vand.u32 4294901760, %v1250_v38 }
 0x14c   :  { %3134 = vmatprep.subr.mxu1 %v3697_v0  ;;  %3092 = vmatpush3.msra.mxu0 %v710_v45  ;;  %v4196_v45 = vand.u32 4294901760, %v1249_v41 }
 0x14d   :  { %3135 = vmatpush3.msra.mxu1 %v3850_v47  ;;  %3093 = vmatprep.subr.mxu0 %v3697_v0  ;;  %v1247_v47 = vld [vmem:[#allocation7 + $0x50] sm:$0xff] }
 0x14e   :  { %3136 = vmatprep.subr.mxu1 %v3697_v0  ;;  %3094 = vmatpush3.msra.mxu0 %v717_v50  ;;  %v1246_v50 = vld [vmem:[#allocation7 + $0x48] sm:$0xff]  ;;  %v4214_v8 = vsub.f32 %v1249_v41, %v4196_v45 }
 0x14f   :  { %3137 = vmatpush3.msra.mxu1 %v3920_v6  ;;  %3095 = vmatprep.subr.mxu0 %v3697_v0  ;;  %v4211_v6 = vsub.f32 %v1250_v38, %v4194_v43 }
 0x150   :  { %3138 = vmatprep.subr.mxu1 %v3697_v0  ;;  %3096 = vmatpush3.msra.mxu0 %v724_v54  ;;  %v1354_v54 = vand.u32 4294901760, %v4189_v36 }
 0x151   :  { %3139 = vmatpush3.msra.mxu1 %v3925_v9  ;;  %3097 = vmatprep.subr.mxu0 %v3697_v0  ;;  %v4217_v9 = vsub.f32 %v1248_v42, %v4198_v46 }
 0x152   :  { %3140 = vmatprep.subr.mxu1 %v3697_v0  ;;  %3098 = vmatpush3.msra.mxu0 %v731_v58  ;;  %v4206_v58 = vand.u32 4294901760, %v1247_v47  ;;  %v1355_v12 = vsub.f32 %v4189_v36, %v1354_v54 }
 0x153   :  { %3141 = vmatpush3.msra.mxu1 %v3933_v13  ;;  %3099 = vmatprep.subr.mxu0 %v3697_v0  ;;  %v1361_v13 = vand.u32 4294901760, %v4203_v55  ;;  %v1382_v25 = vand.u32 4294901760, %v4217_v9 }
 0x154   :  { %3142 = vmatprep.subr.mxu1 %v3697_v0  ;;  %3100 = vmatpush3.msra.mxu0 %v738_v61  ;;  %v4208_v61 = vand.u32 4294901760, %v1246_v50 }
 0x155   :  { %3143 = vmatpush3.msra.mxu1 %v3944_v19  ;;  %3101 = vmatprep.subr.mxu0 %v3697_v0  ;;  %v1368_v19 = vand.u32 4294901760, %v4211_v6 }
 0x156   :  { %3144 = vmatprep.subr.mxu1 %v3697_v0  ;;  %3102 = vmatpush3.msra.mxu0 %v745_v11  ;;  %v4220_v11 = vand.u32 4294901760, %v1245_v51  ;;  %v4231_v18 = vsub.f32 %v1246_v50, %v4208_v61 }
 0x157   :  { %3145 = vmatpush3.msra.mxu1 %v3956_v28  ;;  %3103 = vmatprep.subr.mxu0 %v3697_v0  ;;  %v1356_v28 = vand.u32 4294901760, %v1355_v12 }
 0x158   :  { %3146 = vmatprep.subr.mxu1 %v3697_v0  ;;  %3104 = vmatpush3.msra.mxu0 %v752_v17  ;;  %v4227_v17 = vsub.f32 %v1247_v47, %v4206_v58  ;;  %v4243_v56 = vsub.f32 %v1245_v51, %v4220_v11  ;;  %v1396_v5 = vand.u32 4294901760, %v4231_v18  ;;  %v1239_v47 = vld [vmem:[#allocation7 + $0x10] sm:$0xff] }
 0x159   :  { %3147 = vmatpush3.msra.mxu1 %v3963_v44  ;;  %3105 = vmatprep.subr.mxu0 %v3697_v0  ;;  %v1362_v44 = vsub.f32 %v4203_v55, %v1361_v13 }
 0x15a   :  { %3148 = vmatprep.subr.mxu1 %v3697_v0  ;;  %3106 = vmatpush3.msra.mxu0 %v4934_v16  ;;  %v1389_v48 = vand.u32 4294901760, %v4227_v17  ;;  %v1403_v52 = vand.u32 4294901760, %v4243_v56  ;;  %v1397_v60 = vsub.f32 %v4231_v18, %v1396_v5  ;;  %v1241_v16 = vld [vmem:[#allocation7 + $0x20] sm:$0xff] }
 0x15b   :  { %3149 = vmatpush3.msra.mxu1 %v3976_v57  ;;  %3107 = vmatprep.subr.mxu0 %v3697_v0  ;;  %v1369_v57 = vsub.f32 %v4211_v6, %v1368_v19  ;;  %v1363_v1 = vand.u32 4294901760, %v1362_v44 }
 0x15c   :  { %3150 = vmatprep.subr.mxu1 %v3697_v0  ;;  %3108 = vmatpush3.msra.mxu0 %v4935_v21  ;;  %v1390_v49 = vsub.f32 %v4227_v17, %v1389_v48  ;;  %v1404_v4 = vsub.f32 %v4243_v56, %v1403_v52  ;;  %v1398_v15 = vand.u32 4294901760, %v1397_v60  ;;  %v1411_v21 = vsub.f32 %v4281_v22, %v1410_v39 }
 0x15d   :  { %3151 = vmatpush3.msra.mxu1 %v3986_v2  ;;  %3152 = vmatprep.mubr.msk.f32.mxu1 %vm3698_vm0, %v3697_v0  ;;  %v1383_v2 = vsub.f32 %v4217_v9, %v1382_v25  ;;  %v1370_v7 = vand.u32 4294901760, %v1369_v57  ;;  %v1238_v57 = vld [vmem:[#allocation7 + $0x8] sm:$0xff] }
 0x15e   :  { %3109 = vmatprep.subr.mxu0 %v3697_v0  ;;  %3153 = vmatmul.mubr.f32.vlgmr.msra.gmra.mxu1 %v4019_v24  ;;  %v1391_v3 = vand.u32 4294901760, %v1390_v49  ;;  %v1405_v35 = vand.u32 4294901760, %v1404_v4  ;;  %v1412_v32 = vand.u32 4294901760, %v1411_v21  ;;  %v1237_v49 = vld [vmem:[#allocation7] sm:$0xff] }
 0x15f   :  { %3110 = vmatpush3.msra.mxu0 %v4936_v26  ;;  %3117 = vmatprep.mubr.msk.f32.mxu0 %vm3698_vm0, %v3697_v0  ;;  %v1384_v53 = vand.u32 4294901760, %v1383_v2  ;;  %v1417_v26 = vand.u32 4294901760, %v4290_v59 }
 0x160   :  { %3111 = vmatprep.subr.mxu0 %v3697_v0  ;;  %3190 = vmatprep.subr.mxu1 %v3697_v0 }
 0x161   :  { %3112 = vmatpush3.msra.mxu0 %v4937_v27  ;;  %3222 = vmatprep.mubr.msk.f32.mxu1 %vm3698_vm0, %v3697_v0  ;;  %v4302_v27 = vsub.f32 %v1242_v31, %v4292_v40  ;;  %v1418_v34 = vsub.f32 %v4290_v59, %v1417_v26 }
 0x162   :  { %3113 = vmatprep.subr.mxu0 %v3697_v0  ;;  %3191 = vmatpush3.msra.mxu1 %v1356_v28  ;;  %v4325_v28 = vand.u32 4294901760, %v1239_v47 }
 0x163   :  { %3114 = vmatpush3.msra.mxu0 %v4938_v29  ;;  %3192 = vmatprep.subr.mxu1 %v3697_v0  ;;  %v4304_v29 = vand.u32 4294901760, %v1241_v16  ;;  %v1424_v38 = vand.u32 4294901760, %v4302_v27  ;;  %v1419_v50 = vand.u32 4294901760, %v1418_v34 }
 0x164   :  { %3115 = vmatprep.subr.mxu0 %v3697_v0  ;;  %3193 = vmatpush3.msra.mxu1 %v1363_v1  ;;  %v4336_v2 = vsub.f32 %v1239_v47, %v4325_v28 }
 0x165   :  { %3116 = vmatpush3.msra.mxu0 %v4939_v30  ;;  %3194 = vmatprep.subr.mxu1 %v3697_v0  ;;  %v1240_v30 = vld [vmem:[#allocation7 + $0x18] sm:$0xff]  ;;  %v4314_v41 = vsub.f32 %v1241_v16, %v4304_v29  ;;  %v1425_v51 = vsub.f32 %v4302_v27, %v1424_v38 }
 0x166   :  { %3118 = vmatmul.mubr.f32.vlgmr.msra.gmra.mxu0 %v4019_v24  ;;  %3155 = vmatprep.subr.mxu0 %v3697_v0  ;;  %v1375_v24 = vand.u32 4294901760, %v4214_v8  ;;  %v4318_v42 = vand.u32 4294901760, %v1240_v30  ;;  %v4928_v60 = vand.u32 4294901760, %v4336_v2 }
 0x167   :  { %3187 = vmatprep.mubr.msk.f32.mxu0 %vm3698_vm0, %v3697_v0  ;;  %3156 = vmatpush3.msra.mxu0 %v4186_v33  ;;  %v1431_v12 = vand.u32 4294901760, %v4314_v41 }
 0x168   :  { %3157 = vmatprep.subr.mxu0 %v3697_v0  ;;  %v1376_v63 = vsub.f32 %v4214_v8, %v1375_v24  ;;  %3195 = vmatpush3.msra.mxu1 %v1370_v7  ;;  %v4329_v44 = vsub.f32 %v1240_v30, %v4318_v42  ;;  %v4338_v7 = vand.u32 4294901760, %v1238_v57  ;;  %v1446_v14 = vsub.f32 %v4336_v2, %v4928_v60 }
 0x169   :  { %3158 = vmatpush3.msra.mxu0 %v4191_v37  ;;  %3196 = vmatprep.subr.mxu1 %v3697_v0  ;;  %v1432_v1 = vsub.f32 %v4314_v41, %v1431_v12 }
 0x16a   :  { %3159 = vmatprep.subr.mxu0 %v3697_v0  ;;  %v1377_v20 = vand.u32 4294901760, %v1376_v63  ;;  %v1426_v63 = vand.u32 4294901760, %v1425_v51  ;;  %v4346_v62 = vsub.f32 %v1238_v57, %v4338_v7  ;;  %v1447_v16 = vand.u32 4294901760, %v1446_v14  ;;  %v2576_v14 = vld [vmem:[%s4914_s4] ss:$0 sm:$0xff] }
 0x16b   :  { %3160 = vmatpush3.msra.mxu0 %v4194_v43 }
 0x16c   :  { %3161 = vmatprep.subr.mxu0 %v3697_v0  ;;  %3197 = vmatpush3.msra.mxu1 %v1377_v20  ;;  %v4929_v20 = vand.u32 4294901760, %v4329_v44 }
 0x16d   :  { %3162 = vmatpush3.msra.mxu0 %v4196_v45  ;;  %3198 = vmatprep.subr.mxu1 %v3697_v0 }
 0x16e   :  { %3163 = vmatprep.subr.mxu0 %v3697_v0  ;;  %3199 = vmatpush3.msra.mxu1 %v1384_v53  ;;  %v1433_v53 = vand.u32 4294901760, %v1432_v1  ;;  %v1439_v4 = vsub.f32 %v4329_v44, %v4929_v20 }
 0x16f   :  { %3164 = vmatpush3.msra.mxu0 %v4198_v46  ;;  %3200 = vmatprep.subr.mxu1 %v3697_v0 }
 0x170   :  { %3165 = vmatprep.subr.mxu0 %v3697_v0  ;;  %3201 = vmatpush3.msra.mxu1 %v1391_v3  ;;  %v4348_v3 = vand.u32 4294901760, %v1237_v49 }
 0x171   :  { %3166 = vmatpush3.msra.mxu0 %v4206_v58  ;;  %3202 = vmatprep.subr.mxu1 %v3697_v0 }
 0x172   :  { %3167 = vmatprep.subr.mxu0 %v3697_v0  ;;  %3203 = vmatpush3.msra.mxu1 %v1398_v15  ;;  %v4927_v15 = vand.u32 4294901760, %v4346_v62  ;;  %v4361_v31 = vsub.f32 %v1237_v49, %v4348_v3 }
 0x173   :  { %3168 = vmatpush3.msra.mxu0 %v4208_v61  ;;  %3204 = vmatprep.subr.mxu1 %v3697_v0 }
 0x174   :  { %3169 = vmatprep.subr.mxu0 %v3697_v0  ;;  %3205 = vmatpush3.msra.mxu1 %v1405_v35  ;;  %v1440_v35 = vand.u32 4294901760, %v1439_v4  ;;  %v1453_v21 = vsub.f32 %v4346_v62, %v4927_v15  ;;  %v4926_v30 = vand.u32 4294901760, %v4361_v31 }
 0x175   :  { %3170 = vmatpush3.msra.mxu0 %v4220_v11  ;;  %3206 = vmatprep.subr.mxu1 %v3697_v0 }
 0x176   :  { %3171 = vmatprep.subr.mxu0 %v3697_v0  ;;  %3207 = vmatpush3.msra.mxu1 %v1412_v32  ;;  %v1454_v32 = vand.u32 4294901760, %v1453_v21  ;;  %v1460_v34 = vsub.f32 %v4361_v31, %v4926_v30 }
 0x177   :  { %3172 = vmatpush3.msra.mxu0 %v4275_v10  ;;  %3208 = vmatprep.subr.mxu1 %v3697_v0 }
 0x178   :  { %3173 = vmatprep.subr.mxu0 %v3697_v0  ;;  %3209 = vmatpush3.msra.mxu1 %v1419_v50  ;;  %v1461_v47 = vand.u32 4294901760, %v1460_v34 }
 0x179   :  { %3174 = vmatpush3.msra.mxu0 %v4283_v23  ;;  %3210 = vmatprep.subr.mxu1 %v3697_v0 }
 0x17a   :  { %3175 = vmatprep.subr.mxu0 %v3697_v0  ;;  %3211 = vmatpush3.msra.mxu1 %v1426_v63 }
 0x17b   :  { %3176 = vmatpush3.msra.mxu0 %v4292_v40  ;;  %3212 = vmatprep.subr.mxu1 %v3697_v0 }
 0x17c   :  { %3177 = vmatprep.subr.mxu0 %v3697_v0  ;;  %3213 = vmatpush3.msra.mxu1 %v1433_v53 }
 0x17d   :  { %3178 = vmatpush3.msra.mxu0 %v4304_v29  ;;  %3214 = vmatprep.subr.mxu1 %v3697_v0 }
 0x17e   :  { %3179 = vmatprep.subr.mxu0 %v3697_v0  ;;  %3215 = vmatpush3.msra.mxu1 %v1440_v35 }
 0x17f   :  { %3180 = vmatpush3.msra.mxu0 %v4318_v42  ;;  %3216 = vmatprep.subr.mxu1 %v3697_v0 }
 0x180   :  { %3181 = vmatprep.subr.mxu0 %v3697_v0  ;;  %3217 = vmatpush3.msra.mxu1 %v1447_v16 }
 0x181   :  { %3182 = vmatpush3.msra.mxu0 %v4325_v28  ;;  %3218 = vmatprep.subr.mxu1 %v3697_v0 }
 0x182   :  { %3183 = vmatprep.subr.mxu0 %v3697_v0  ;;  %3219 = vmatpush3.msra.mxu1 %v1454_v32 }
 0x183   :  { %3184 = vmatpush3.msra.mxu0 %v4338_v7  ;;  %3220 = vmatprep.subr.mxu1 %v3697_v0 }
 0x184   :  { %3185 = vmatprep.subr.mxu0 %v3697_v0  ;;  %3221 = vmatpush3.msra.mxu1 %v1461_v47 }
 0x185   :  { %3186 = vmatpush3.msra.mxu0 %v4348_v3  ;;  %3260 = vmatprep.subr.mxu1 %v3697_v0 }
 0x186   :  { %3225 = vmatprep.subr.mxu0 %v3697_v0 }
 0x1dc   :  { %v833_v50 = vpop.f32.mrf.mxu1 }
 0x1de   :  { %v3014_v51 = vpop.f32.mrf.mxu1 }
 0x1e4   :  { %v682_v57 = vpop.f32.mrf.mxu0 }
 0x1e5   :  { %v683_v35 = vadd.f32 %v2576_v14, %v682_v57 }
 0x1e6   :  { %v2979_v63 = vpop.f32.mrf.mxu0 }
 0x1e7   :  { %v834_v21 = vadd.f32 %v833_v50, %v683_v35 }
 0x1fc   :  { %v1026_v1 = vpop.f32.mrf.mxu1 }
 0x1fe   :  { %v3084_v49 = vpop.f32.mrf.mxu1 }
 0x205   :  { %v937_v53 = vpop.f32.mrf.mxu0 }
 0x206   :  { %v938_v34 = vadd.f32 %v937_v53, %v834_v21  ;;  %v1909_v53 = vld [vmem:[#allocation9 + $0x38] sm:$0xff] }
 0x207   :  { %v3049_v4 = vpop.f32.mrf.mxu0  ;;  %v4637_v35 = vand.u32 4294901760, %v1909_v53 }
 0x208   :  { %v1027_v47 = vadd.f32 %v1026_v1, %v938_v34 }
 0x21e   :  { %v1232_v16 = vpop.f32.mrf.mxu1 }
 0x220   :  { %v3154_v32 = vpop.f32.mrf.mxu1 }
 0x221   :  { %v4643_v32 = vsub.f32 %v1909_v53, %v4637_v35 }
 0x226   :  { %v1145_v30 = vpop.f32.mrf.mxu0 }
 0x227   :  { %v1146_v15 = vadd.f32 %v1145_v30, %v1027_v47  ;;  %v1907_v47 = vld [vmem:[#allocation9 + $0x28] sm:$0xff] }
 0x228   :  { %v3119_v60 = vpop.f32.mrf.mxu0 }
 0x229   :  { %v1233_v51 = vadd.f32 %v1232_v16, %v1146_v15  ;;  %v1908_v16 = vld [vmem:[#allocation9 + $0x30] sm:$0xff] }
 0x22a   :  { %v4645_v34 = vand.u32 4294901760, %v1908_v16 }
 0x22b   :  { %v1236_v20 = vmax.f32 %v1233_v51, 0.0 }
 0x22d   :  { %v4381_v63 = vand.u32 4294901760, %v1236_v20 }
 0x22f   :  { %v4384_v49 = vsub.f32 %v1236_v20, %v4381_v63  ;;  %3223 = vmatmul.mubr.f32.vlgmr.msra.gmra.mxu1 %v4381_v63 }
 0x230   :  { %3261 = vmatpush3.msra.mxu1 %v4186_v33  ;;  %3292 = vmatprep.mubr.msk.f32.mxu1 %vm3698_vm0, %v3697_v0 }
 0x231   :  { %v1343_v50 = vand.u32 4294901760, %v4384_v49  ;;  %3262 = vmatprep.subr.mxu1 %v3697_v0 }
 0x232   :  { %3263 = vmatpush3.msra.mxu1 %v4191_v37 }
 0x233   :  { %3264 = vmatprep.subr.mxu1 %v3697_v0  ;;  %v1344_v60 = vsub.f32 %v4384_v49, %v1343_v50 }
 0x234   :  { %3265 = vmatpush3.msra.mxu1 %v4194_v43 }
 0x235   :  { %3266 = vmatprep.subr.mxu1 %v3697_v0  ;;  %v1345_v20 = vand.u32 4294901760, %v1344_v60  ;;  %v1906_v60 = vld [vmem:[#allocation9 + $0x20] sm:$0xff] }
 0x236   :  { %3267 = vmatpush3.msra.mxu1 %v4196_v45 }
 0x237   :  { %3268 = vmatprep.subr.mxu1 %v3697_v0  ;;  %3188 = vmatmul.mubr.f32.vlgmr.msra.gmra.mxu0 %v1345_v20 }
 0x238   :  { %3226 = vmatpush3.msra.mxu0 %v4189_v36  ;;  %3269 = vmatpush3.msra.mxu1 %v4198_v46  ;;  %v4941_v36 = vand.u32 4294901760, %v4336_v2 }
 0x239   :  { %3227 = vmatprep.subr.mxu0 %v3697_v0  ;;  %3270 = vmatprep.subr.mxu1 %v3697_v0 }
 0x23a   :  { %3228 = vmatpush3.msra.mxu0 %v4203_v55  ;;  %3271 = vmatpush3.msra.mxu1 %v4206_v58 }
 0x23b   :  { %3229 = vmatprep.subr.mxu0 %v3697_v0  ;;  %3272 = vmatprep.subr.mxu1 %v3697_v0 }
 0x23c   :  { %3230 = vmatpush3.msra.mxu0 %v4211_v6  ;;  %3273 = vmatpush3.msra.mxu1 %v4208_v61  ;;  %v1914_v6 = vld [vmem:[#allocation9 + $0x60] sm:$0xff] }
 0x23d   :  { %3231 = vmatprep.subr.mxu0 %v3697_v0  ;;  %3274 = vmatprep.subr.mxu1 %v3697_v0 }
 0x23e   :  { %3232 = vmatpush3.msra.mxu0 %v4214_v8  ;;  %3275 = vmatpush3.msra.mxu1 %v4220_v11  ;;  %v1913_v8 = vld [vmem:[#allocation9 + $0x58] sm:$0xff] }
 0x23f   :  { %3233 = vmatprep.subr.mxu0 %v3697_v0  ;;  %3276 = vmatprep.subr.mxu1 %v3697_v0 }
 0x240   :  { %3234 = vmatpush3.msra.mxu0 %v4217_v9  ;;  %3277 = vmatpush3.msra.mxu1 %v4275_v10 }
 0x241   :  { %3235 = vmatprep.subr.mxu0 %v3697_v0  ;;  %3278 = vmatprep.subr.mxu1 %v3697_v0 }
 0x242   :  { %3236 = vmatpush3.msra.mxu0 %v4227_v17  ;;  %3279 = vmatpush3.msra.mxu1 %v4283_v23  ;;  %v1912_v17 = vld [vmem:[#allocation9 + $0x50] sm:$0xff] }
 0x243   :  { %3237 = vmatprep.subr.mxu0 %v3697_v0  ;;  %3280 = vmatprep.subr.mxu1 %v3697_v0 }
 0x244   :  { %3238 = vmatpush3.msra.mxu0 %v4231_v18  ;;  %3281 = vmatpush3.msra.mxu1 %v4292_v40  ;;  %v1911_v18 = vld [vmem:[#allocation9 + $0x48] sm:$0xff] }
 0x245   :  { %3239 = vmatprep.subr.mxu0 %v3697_v0  ;;  %3282 = vmatprep.subr.mxu1 %v3697_v0 }
 0x246   :  { %3240 = vmatpush3.msra.mxu0 %v4243_v56  ;;  %3283 = vmatpush3.msra.mxu1 %v4304_v29  ;;  %v4570_v56 = vand.u32 4294901760, %v1911_v18 }
 0x247   :  { %3241 = vmatprep.subr.mxu0 %v3697_v0  ;;  %3284 = vmatprep.subr.mxu1 %v3697_v0 }
 0x248   :  { %3242 = vmatpush3.msra.mxu0 %v4281_v22  ;;  %3285 = vmatpush3.msra.mxu1 %v4318_v42 }
 0x249   :  { %3243 = vmatprep.subr.mxu0 %v3697_v0  ;;  %3286 = vmatprep.subr.mxu1 %v3697_v0 }
 0x24a   :  { %3244 = vmatpush3.msra.mxu0 %v4290_v59  ;;  %3287 = vmatpush3.msra.mxu1 %v4325_v28 }
 0x24b   :  { %3245 = vmatprep.subr.mxu0 %v3697_v0  ;;  %3288 = vmatprep.subr.mxu1 %v3697_v0 }
 0x24c   :  { %3246 = vmatpush3.msra.mxu0 %v4302_v27  ;;  %3289 = vmatpush3.msra.mxu1 %v4338_v7 }
 0x24d   :  { %3247 = vmatprep.subr.mxu0 %v3697_v0  ;;  %3290 = vmatprep.subr.mxu1 %v3697_v0 }
 0x24e   :  { %3248 = vmatpush3.msra.mxu0 %v4314_v41  ;;  %3291 = vmatpush3.msra.mxu1 %v4348_v3 }
 0x24f   :  { %3249 = vmatprep.subr.mxu0 %v3697_v0  ;;  %3293 = vmatmul.mubr.f32.vlgmr.msra.gmra.mxu1 %v1343_v50  ;;  %v4654_v50 = vand.u32 4294901760, %v1907_v47 }
 0x250   :  { %3330 = vmatprep.subr.mxu1 %v3697_v0  ;;  %3250 = vmatpush3.msra.mxu0 %v4329_v44 }
 0x251   :  { %3331 = vmatpush3.msra.mxu1 %v4186_v33  ;;  %3251 = vmatprep.subr.mxu0 %v3697_v0  ;;  %v4940_v33 = vand.u32 4294901760, %v4329_v44 }
 0x252   :  { %3332 = vmatprep.subr.mxu1 %v3697_v0  ;;  %3252 = vmatpush3.msra.mxu0 %v4336_v2 }
 0x253   :  { %3333 = vmatpush3.msra.mxu1 %v4191_v37  ;;  %3253 = vmatprep.subr.mxu0 %v3697_v0  ;;  %v4942_v37 = vand.u32 4294901760, %v4346_v62 }
 0x254   :  { %3334 = vmatprep.subr.mxu1 %v3697_v0  ;;  %3254 = vmatpush3.msra.mxu0 %v4346_v62 }
 0x255   :  { %3335 = vmatpush3.msra.mxu1 %v4194_v43  ;;  %3255 = vmatprep.subr.mxu0 %v3697_v0  ;;  %v4943_v43 = vand.u32 4294901760, %v4361_v31 }
 0x256   :  { %3336 = vmatprep.subr.mxu1 %v3697_v0  ;;  %3256 = vmatpush3.msra.mxu0 %v4361_v31 }
 0x257   :  { %3257 = vmatprep.mubr.msk.f32.mxu0 %vm3698_vm0, %v3697_v0  ;;  %3337 = vmatpush3.msra.mxu1 %v4196_v45  ;;  %v1917_v45 = vld [vmem:[#allocation9 + $0x78] sm:$0xff] }
 0x258   :  { %3258 = vmatmul.mubr.f32.vlgmr.msra.gmra.mxu0 %v4384_v49  ;;  %3295 = vmatprep.subr.mxu0 %v3697_v0  ;;  %v4652_v49 = vsub.f32 %v1908_v16, %v4645_v34 }
 0x259   :  { %3338 = vmatprep.subr.mxu1 %v3697_v0  ;;  %3296 = vmatpush3.msra.mxu0 %v1354_v54  ;;  %v1916_v54 = vld [vmem:[#allocation9 + $0x70] sm:$0xff] }
 0x25a   :  { %3339 = vmatpush3.msra.mxu1 %v4198_v46  ;;  %3297 = vmatprep.subr.mxu0 %v3697_v0  ;;  %v4548_v46 = vand.u32 4294901760, %v1917_v45 }
 0x25b   :  { %3340 = vmatprep.subr.mxu1 %v3697_v0  ;;  %3298 = vmatpush3.msra.mxu0 %v1361_v13  ;;  %v4560_v13 = vand.u32 4294901760, %v1913_v8 }
 0x25c   :  { %3341 = vmatpush3.msra.mxu1 %v4206_v58  ;;  %3299 = vmatprep.subr.mxu0 %v3697_v0  ;;  %v4551_v55 = vsub.f32 %v1917_v45, %v4548_v46  ;;  %v4553_v58 = vand.u32 4294901760, %v1916_v54 }
 0x25d   :  { %3342 = vmatprep.subr.mxu1 %v3697_v0  ;;  %3300 = vmatpush3.msra.mxu0 %v1368_v19  ;;  %v1910_v19 = vld [vmem:[#allocation9 + $0x40] sm:$0xff] }
 0x25e   :  { %3343 = vmatpush3.msra.mxu1 %v4208_v61  ;;  %3301 = vmatprep.subr.mxu0 %v3697_v0  ;;  %v1915_v61 = vld [vmem:[#allocation9 + $0x68] sm:$0xff]  ;;  %v4582_v22 = vand.u32 4294901760, %v1910_v19 }
 0x25f   :  { %3344 = vmatprep.subr.mxu1 %v3697_v0  ;;  %3302 = vmatpush3.msra.mxu0 %v1375_v24  ;;  %v4556_v9 = vand.u32 4294901760, %v1915_v61  ;;  %v2019_v24 = vand.u32 4294901760, %v4551_v55 }
 0x260   :  { %3345 = vmatpush3.msra.mxu1 %v4220_v11  ;;  %3303 = vmatprep.subr.mxu0 %v3697_v0  ;;  %v4558_v11 = vand.u32 4294901760, %v1914_v6 }
 0x261   :  { %3346 = vmatprep.subr.mxu1 %v3697_v0  ;;  %3304 = vmatpush3.msra.mxu0 %v1382_v25  ;;  %v4565_v25 = vsub.f32 %v1916_v54, %v4553_v58 }
 0x262   :  { %3347 = vmatpush3.msra.mxu1 %v4275_v10  ;;  %3305 = vmatprep.subr.mxu0 %v3697_v0  ;;  %v4579_v10 = vsub.f32 %v1913_v8, %v4560_v13 }
 0x263   :  { %3348 = vmatprep.subr.mxu1 %v3697_v0  ;;  %3306 = vmatpush3.msra.mxu0 %v1389_v48  ;;  %v4568_v48 = vand.u32 4294901760, %v1912_v17 }
 0x264   :  { %3349 = vmatpush3.msra.mxu1 %v4283_v23  ;;  %3307 = vmatprep.subr.mxu0 %v3697_v0  ;;  %v2020_v23 = vsub.f32 %v4551_v55, %v2019_v24 }
 0x265   :  { %3350 = vmatprep.subr.mxu1 %v3697_v0  ;;  %3308 = vmatpush3.msra.mxu0 %v1396_v5  ;;  %v4573_v5 = vsub.f32 %v1915_v61, %v4556_v9  ;;  %v4589_v59 = vsub.f32 %v1912_v17, %v4568_v48  ;;  %v1904_v17 = vld [vmem:[#allocation9 + $0x10] sm:$0xff] }
 0x266   :  { %3351 = vmatpush3.msra.mxu1 %v4292_v40  ;;  %3309 = vmatprep.subr.mxu0 %v3697_v0  ;;  %v4593_v40 = vsub.f32 %v1911_v18, %v4570_v56 }
 0x267   :  { %3352 = vmatprep.subr.mxu1 %v3697_v0  ;;  %3310 = vmatpush3.msra.mxu0 %v1403_v52  ;;  %v4576_v52 = vsub.f32 %v1914_v6, %v4558_v11 }
 0x268   :  { %3353 = vmatpush3.msra.mxu1 %v4304_v29  ;;  %3311 = vmatprep.subr.mxu0 %v3697_v0  ;;  %v2047_v29 = vand.u32 4294901760, %v4579_v10  ;;  %v2061_v62 = vand.u32 4294901760, %v4593_v40 }
 0x269   :  { %3354 = vmatprep.subr.mxu1 %v3697_v0  ;;  %3312 = vmatpush3.msra.mxu0 %v1410_v39  ;;  %v2026_v39 = vand.u32 4294901760, %v4565_v25  ;;  %v2040_v27 = vand.u32 4294901760, %v4576_v52 }
 0x26a   :  { %3355 = vmatpush3.msra.mxu1 %v4318_v42  ;;  %3313 = vmatprep.subr.mxu0 %v3697_v0  ;;  %v2054_v42 = vand.u32 4294901760, %v4589_v59  ;;  %v2062_v1 = vsub.f32 %v4593_v40, %v2061_v62 }
 0x26b   :  { %3356 = vmatprep.subr.mxu1 %v3697_v0  ;;  %3314 = vmatpush3.msra.mxu0 %v1417_v26  ;;  %v2033_v26 = vand.u32 4294901760, %v4573_v5  ;;  %v2027_v41 = vsub.f32 %v4565_v25, %v2026_v39  ;;  %v2041_v44 = vsub.f32 %v4576_v52, %v2040_v27 }
 0x26c   :  { %3357 = vmatpush3.msra.mxu1 %v4325_v28  ;;  %3315 = vmatprep.subr.mxu0 %v3697_v0  ;;  %v2055_v31 = vsub.f32 %v4589_v59, %v2054_v42  ;;  %v2063_v21 = vand.u32 4294901760, %v2062_v1 }
 0x26d   :  { %3358 = vmatprep.subr.mxu1 %v3697_v0  ;;  %3316 = vmatpush3.msra.mxu0 %v1424_v38  ;;  %v2021_v38 = vand.u32 4294901760, %v2020_v23  ;;  %v2034_v28 = vsub.f32 %v4573_v5, %v2033_v26  ;;  %v2028_v2 = vand.u32 4294901760, %v2027_v41  ;;  %v2042_v15 = vand.u32 4294901760, %v2041_v44 }
 0x26e   :  { %3359 = vmatpush3.msra.mxu1 %v4338_v7  ;;  %3317 = vmatprep.subr.mxu0 %v3697_v0  ;;  %v2048_v7 = vsub.f32 %v4579_v10, %v2047_v29  ;;  %v2056_v4 = vand.u32 4294901760, %v2055_v31  ;;  %v1902_v31 = vld [vmem:[#allocation9] sm:$0xff] }
 0x26f   :  { %3360 = vmatprep.subr.mxu1 %v3697_v0  ;;  %3318 = vmatpush3.msra.mxu0 %v1431_v12  ;;  %v4605_v12 = vsub.f32 %v1910_v19, %v4582_v22 }
 0x270   :  { %3361 = vmatpush3.msra.mxu1 %v4348_v3  ;;  %3362 = vmatprep.mubr.msk.f32.mxu1 %vm3698_vm0, %v3697_v0  ;;  %v2035_v3 = vand.u32 4294901760, %v2034_v28  ;;  %v2049_v57 = vand.u32 4294901760, %v2048_v7  ;;  %v1903_v28 = vld [vmem:[#allocation9 + $0x8] sm:$0xff] }
 0x271   :  { %3319 = vmatprep.subr.mxu0 %v3697_v0  ;;  %3363 = vmatmul.mubr.f32.vlgmr.msra.gmra.mxu1 %v4381_v63  ;;  %v2068_v30 = vand.u32 4294901760, %v4605_v12 }
 0x272   :  { %3320 = vmatpush3.msra.mxu0 %v4940_v33  ;;  %3327 = vmatprep.mubr.msk.f32.mxu0 %vm3698_vm0, %v3697_v0  ;;  %v2082_v33 = vand.u32 4294901760, %v4652_v49 }
 0x273   :  { %3321 = vmatprep.subr.mxu0 %v3697_v0  ;;  %3400 = vmatprep.subr.mxu1 %v3697_v0  ;;  %v2069_v14 = vsub.f32 %v4605_v12, %v2068_v30 }
 0x274   :  { %3322 = vmatpush3.msra.mxu0 %v4941_v36  ;;  %3432 = vmatprep.mubr.msk.f32.mxu1 %vm3698_vm0, %v3697_v0  ;;  %v4664_v36 = vsub.f32 %v1907_v47, %v4654_v50  ;;  %v2083_v54 = vsub.f32 %v4652_v49, %v2082_v33 }
 0x275   :  { %3323 = vmatprep.subr.mxu0 %v3697_v0  ;;  %3401 = vmatpush3.msra.mxu1 %v2021_v38  ;;  %v2070_v51 = vand.u32 4294901760, %v2069_v14  ;;  %v4687_v38 = vand.u32 4294901760, %v1904_v17 }
 0x276   :  { %3324 = vmatpush3.msra.mxu0 %v4942_v37  ;;  %3402 = vmatprep.subr.mxu1 %v3697_v0  ;;  %v4666_v37 = vand.u32 4294901760, %v1906_v60  ;;  %v2089_v61 = vand.u32 4294901760, %v4664_v36  ;;  %v2084_v18 = vand.u32 4294901760, %v2083_v54 }
 0x277   :  { %3325 = vmatprep.subr.mxu0 %v3697_v0  ;;  %3403 = vmatpush3.msra.mxu1 %v2028_v2  ;;  %v4698_v7 = vsub.f32 %v1904_v17, %v4687_v38 }
 0x278   :  { %3326 = vmatpush3.msra.mxu0 %v4943_v43  ;;  %3404 = vmatprep.subr.mxu1 %v3697_v0  ;;  %v1905_v43 = vld [vmem:[#allocation9 + $0x18] sm:$0xff]  ;;  %v4676_v6 = vsub.f32 %v1906_v60, %v4666_v37  ;;  %v2090_v19 = vsub.f32 %v4664_v36, %v2089_v61 }
 0x279   :  { %3328 = vmatmul.mubr.f32.vlgmr.msra.gmra.mxu0 %v4381_v63  ;;  %3365 = vmatprep.subr.mxu0 %v3697_v0  ;;  %v2075_v63 = vand.u32 4294901760, %v4643_v32  ;;  %v4680_v8 = vand.u32 4294901760, %v1905_v43  ;;  %v4932_v1 = vand.u32 4294901760, %v4698_v7 }
 0x27a   :  { %3397 = vmatprep.mubr.msk.f32.mxu0 %vm3698_vm0, %v3697_v0  ;;  %3366 = vmatpush3.msra.mxu0 %v4548_v46  ;;  %v2096_v23 = vand.u32 4294901760, %v4676_v6  ;;  %v2091_v44 = vand.u32 4294901760, %v2090_v19 }
 0x27b   :  { %3367 = vmatprep.subr.mxu0 %v3697_v0  ;;  %3405 = vmatpush3.msra.mxu1 %v2035_v3  ;;  %v2076_v20 = vsub.f32 %v4643_v32, %v2075_v63  ;;  %v4691_v41 = vsub.f32 %v1905_v43, %v4680_v8  ;;  %v4700_v3 = vand.u32 4294901760, %v1903_v28  ;;  %v2111_v16 = vsub.f32 %v4698_v7, %v4932_v1 }
 0x27c   :  { %3368 = vmatpush3.msra.mxu0 %v4553_v58  ;;  %3406 = vmatprep.subr.mxu1 %v3697_v0  ;;  %v2097_v2 = vsub.f32 %v4676_v6, %v2096_v23 }
 0x27d   :  { %3369 = vmatprep.subr.mxu0 %v3697_v0  ;;  %3407 = vmatpush3.msra.mxu1 %v2042_v15  ;;  %v2077_v45 = vand.u32 4294901760, %v2076_v20  ;;  %v4933_v15 = vand.u32 4294901760, %v4691_v41  ;;  %v4708_v53 = vsub.f32 %v1903_v28, %v4700_v3  ;;  %v2112_v60 = vand.u32 4294901760, %v2111_v16  ;;  %v2577_v16 = vld [vmem:[%s4916_s6] ss:$0 sm:$0xff] }
 0x27e   :  { %3370 = vmatpush3.msra.mxu0 %v4556_v9  ;;  %3408 = vmatprep.subr.mxu1 %v3697_v0 }
 0x27f   :  { %3371 = vmatprep.subr.mxu0 %v3697_v0  ;;  %3409 = vmatpush3.msra.mxu1 %v2049_v57  ;;  %v2098_v57 = vand.u32 4294901760, %v2097_v2  ;;  %v2104_v14 = vsub.f32 %v4691_v41, %v4933_v15 }
 0x280   :  { %3372 = vmatpush3.msra.mxu0 %v4558_v11  ;;  %3410 = vmatprep.subr.mxu1 %v3697_v0 }
 0x281   :  { %3373 = vmatprep.subr.mxu0 %v3697_v0  ;;  %3411 = vmatpush3.msra.mxu1 %v2056_v4  ;;  %v4710_v4 = vand.u32 4294901760, %v1902_v31 }
 0x282   :  { %3374 = vmatpush3.msra.mxu0 %v4560_v13  ;;  %3412 = vmatprep.subr.mxu1 %v3697_v0 }
 0x283   :  { %3375 = vmatprep.subr.mxu0 %v3697_v0  ;;  %3413 = vmatpush3.msra.mxu1 %v2063_v21  ;;  %v4931_v21 = vand.u32 4294901760, %v4708_v53  ;;  %v4723_v47 = vsub.f32 %v1902_v31, %v4710_v4 }
 0x284   :  { %3376 = vmatpush3.msra.mxu0 %v4568_v48  ;;  %3414 = vmatprep.subr.mxu1 %v3697_v0 }
 0x285   :  { %3377 = vmatprep.subr.mxu0 %v3697_v0  ;;  %3415 = vmatpush3.msra.mxu1 %v2070_v51  ;;  %v2105_v51 = vand.u32 4294901760, %v2104_v14  ;;  %v2118_v20 = vsub.f32 %v4708_v53, %v4931_v21  ;;  %v4930_v43 = vand.u32 4294901760, %v4723_v47 }
 0x286   :  { %3378 = vmatpush3.msra.mxu0 %v4570_v56  ;;  %3416 = vmatprep.subr.mxu1 %v3697_v0 }
 0x287   :  { %3379 = vmatprep.subr.mxu0 %v3697_v0  ;;  %3417 = vmatpush3.msra.mxu1 %v2077_v45  ;;  %v2119_v45 = vand.u32 4294901760, %v2118_v20  ;;  %v2125_v54 = vsub.f32 %v4723_v47, %v4930_v43 }
 0x288   :  { %3380 = vmatpush3.msra.mxu0 %v4582_v22  ;;  %3418 = vmatprep.subr.mxu1 %v3697_v0 }
 0x289   :  { %3381 = vmatprep.subr.mxu0 %v3697_v0  ;;  %3419 = vmatpush3.msra.mxu1 %v2084_v18  ;;  %v2126_v17 = vand.u32 4294901760, %v2125_v54 }
 0x28a   :  { %3382 = vmatpush3.msra.mxu0 %v4637_v35  ;;  %3420 = vmatprep.subr.mxu1 %v3697_v0 }
 0x28b   :  { %3383 = vmatprep.subr.mxu0 %v3697_v0  ;;  %3421 = vmatpush3.msra.mxu1 %v2091_v44 }
 0x28c   :  { %3384 = vmatpush3.msra.mxu0 %v4645_v34  ;;  %3422 = vmatprep.subr.mxu1 %v3697_v0 }
 0x28d   :  { %3385 = vmatprep.subr.mxu0 %v3697_v0  ;;  %3423 = vmatpush3.msra.mxu1 %v2098_v57 }
 0x28e   :  { %3386 = vmatpush3.msra.mxu0 %v4654_v50  ;;  %3424 = vmatprep.subr.mxu1 %v3697_v0 }
 0x28f   :  { %3387 = vmatprep.subr.mxu0 %v3697_v0  ;;  %3425 = vmatpush3.msra.mxu1 %v2105_v51 }
 0x290   :  { %3388 = vmatpush3.msra.mxu0 %v4666_v37  ;;  %3426 = vmatprep.subr.mxu1 %v3697_v0 }
 0x291   :  { %3389 = vmatprep.subr.mxu0 %v3697_v0  ;;  %3427 = vmatpush3.msra.mxu1 %v2112_v60 }
 0x292   :  { %3390 = vmatpush3.msra.mxu0 %v4680_v8  ;;  %3428 = vmatprep.subr.mxu1 %v3697_v0 }
 0x293   :  { %3391 = vmatprep.subr.mxu0 %v3697_v0  ;;  %3429 = vmatpush3.msra.mxu1 %v2119_v45 }
 0x294   :  { %3392 = vmatpush3.msra.mxu0 %v4687_v38  ;;  %3430 = vmatprep.subr.mxu1 %v3697_v0 }
 0x295   :  { %3393 = vmatprep.subr.mxu0 %v3697_v0  ;;  %3431 = vmatpush3.msra.mxu1 %v2126_v17 }
 0x296   :  { %3394 = vmatpush3.msra.mxu0 %v4700_v3  ;;  %3470 = vmatprep.subr.mxu1 %v3697_v0 }
 0x297   :  { %3395 = vmatprep.subr.mxu0 %v3697_v0 }
 0x298   :  { %3396 = vmatpush3.msra.mxu0 %v4710_v4 }
 0x299   :  { %3435 = vmatprep.subr.mxu0 %v3697_v0 }
 0x2ef   :  { %v1498_v18 = vpop.f32.mrf.mxu1 }
 0x2f1   :  { %v3224_v19 = vpop.f32.mrf.mxu1 }
 0x2f7   :  { %v1347_v28 = vpop.f32.mrf.mxu0 }
 0x2f8   :  { %v1348_v51 = vadd.f32 %v2577_v16, %v1347_v28 }
 0x2f9   :  { %v3189_v44 = vpop.f32.mrf.mxu0 }
 0x2fa   :  { %v1499_v20 = vadd.f32 %v1498_v18, %v1348_v51 }
 0x30f   :  { %v1691_v2 = vpop.f32.mrf.mxu1 }
 0x311   :  { %v3294_v31 = vpop.f32.mrf.mxu1 }
 0x318   :  { %v1602_v57 = vpop.f32.mrf.mxu0 }
 0x319   :  { %v1603_v54 = vadd.f32 %v1602_v57, %v1499_v20 }
 0x31a   :  { %v3259_v14 = vpop.f32.mrf.mxu0 }
 0x31b   :  { %v1692_v17 = vadd.f32 %v1691_v2, %v1603_v54 }
 0x331   :  { %v1897_v60 = vpop.f32.mrf.mxu1 }
 0x333   :  { %v3364_v45 = vpop.f32.mrf.mxu1 }
 0x339   :  { %v1810_v43 = vpop.f32.mrf.mxu0 }
 0x33a   :  { %v1811_v21 = vadd.f32 %v1810_v43, %v1692_v17 }
 0x33b   :  { %v3329_v1 = vpop.f32.mrf.mxu0 }
 0x33c   :  { %v1898_v19 = vadd.f32 %v1897_v60, %v1811_v21 }
 0x33e   :  { %v1901_v15 = vmax.f32 %v1898_v19, 0.0 }
 0x340   :  { %v4743_v44 = vand.u32 4294901760, %v1901_v15 }
 0x342   :  { %v4746_v31 = vsub.f32 %v1901_v15, %v4743_v44  ;;  %3433 = vmatmul.mubr.f32.vlgmr.msra.gmra.mxu1 %v4743_v44 }
 0x343   :  { %3471 = vmatpush3.msra.mxu1 %v4548_v46  ;;  %3502 = vmatprep.mubr.msk.f32.mxu1 %vm3698_vm0, %v3697_v0 }
 0x344   :  { %v2008_v18 = vand.u32 4294901760, %v4746_v31  ;;  %3472 = vmatprep.subr.mxu1 %v3697_v0 }
 0x345   :  { %3473 = vmatpush3.msra.mxu1 %v4553_v58 }
 0x346   :  { %3474 = vmatprep.subr.mxu1 %v3697_v0  ;;  %v2009_v1 = vsub.f32 %v4746_v31, %v2008_v18 }
 0x347   :  { %3475 = vmatpush3.msra.mxu1 %v4556_v9 }
 0x348   :  { %3476 = vmatprep.subr.mxu1 %v3697_v0  ;;  %v2010_v15 = vand.u32 4294901760, %v2009_v1 }
 0x349   :  { %3477 = vmatpush3.msra.mxu1 %v4558_v11 }
 0x34a   :  { %3478 = vmatprep.subr.mxu1 %v3697_v0  ;;  %3398 = vmatmul.mubr.f32.vlgmr.msra.gmra.mxu0 %v2010_v15 }
 0x34b   :  { %3436 = vmatpush3.msra.mxu0 %v4551_v55  ;;  %3479 = vmatpush3.msra.mxu1 %v4560_v13  ;;  %v4945_v55 = vand.u32 4294901760, %v4698_v7 }
 0x34c   :  { %3437 = vmatprep.subr.mxu0 %v3697_v0  ;;  %3480 = vmatprep.subr.mxu1 %v3697_v0 }
 0x34d   :  { %3438 = vmatpush3.msra.mxu0 %v4565_v25  ;;  %3481 = vmatpush3.msra.mxu1 %v4568_v48 }
 0x34e   :  { %3439 = vmatprep.subr.mxu0 %v3697_v0  ;;  %3482 = vmatprep.subr.mxu1 %v3697_v0 }
 0x34f   :  { %3440 = vmatpush3.msra.mxu0 %v4573_v5  ;;  %3483 = vmatpush3.msra.mxu1 %v4570_v56 }
 0x350   :  { %3441 = vmatprep.subr.mxu0 %v3697_v0  ;;  %3484 = vmatprep.subr.mxu1 %v3697_v0 }
 0x351   :  { %3442 = vmatpush3.msra.mxu0 %v4576_v52  ;;  %3485 = vmatpush3.msra.mxu1 %v4582_v22 }
 0x352   :  { %3443 = vmatprep.subr.mxu0 %v3697_v0  ;;  %3486 = vmatprep.subr.mxu1 %v3697_v0 }
 0x353   :  { %3444 = vmatpush3.msra.mxu0 %v4579_v10  ;;  %3487 = vmatpush3.msra.mxu1 %v4637_v35  ;;  %v2578_v10 = vld [vmem:[%s4918_s8] ss:$0 sm:$0xff] }
 0x354   :  { %3445 = vmatprep.subr.mxu0 %v3697_v0  ;;  %3488 = vmatprep.subr.mxu1 %v3697_v0 }
 0x355   :  { %3446 = vmatpush3.msra.mxu0 %v4589_v59  ;;  %3489 = vmatpush3.msra.mxu1 %v4645_v34 }
 0x356   :  { %3447 = vmatprep.subr.mxu0 %v3697_v0  ;;  %3490 = vmatprep.subr.mxu1 %v3697_v0 }
 0x357   :  { %3448 = vmatpush3.msra.mxu0 %v4593_v40  ;;  %3491 = vmatpush3.msra.mxu1 %v4654_v50 }
 0x358   :  { %3449 = vmatprep.subr.mxu0 %v3697_v0  ;;  %3492 = vmatprep.subr.mxu1 %v3697_v0 }
 0x359   :  { %3450 = vmatpush3.msra.mxu0 %v4605_v12  ;;  %3493 = vmatpush3.msra.mxu1 %v4666_v37 }
 0x35a   :  { %3451 = vmatprep.subr.mxu0 %v3697_v0  ;;  %3494 = vmatprep.subr.mxu1 %v3697_v0 }
 0x35b   :  { %3452 = vmatpush3.msra.mxu0 %v4643_v32  ;;  %3495 = vmatpush3.msra.mxu1 %v4680_v8 }
 0x35c   :  { %3453 = vmatprep.subr.mxu0 %v3697_v0  ;;  %3496 = vmatprep.subr.mxu1 %v3697_v0 }
 0x35d   :  { %3454 = vmatpush3.msra.mxu0 %v4652_v49  ;;  %3497 = vmatpush3.msra.mxu1 %v4687_v38 }
 0x35e   :  { %3455 = vmatprep.subr.mxu0 %v3697_v0  ;;  %3498 = vmatprep.subr.mxu1 %v3697_v0 }
 0x35f   :  { %3456 = vmatpush3.msra.mxu0 %v4664_v36  ;;  %3499 = vmatpush3.msra.mxu1 %v4700_v3 }
 0x360   :  { %3457 = vmatprep.subr.mxu0 %v3697_v0  ;;  %3500 = vmatprep.subr.mxu1 %v3697_v0 }
 0x361   :  { %3458 = vmatpush3.msra.mxu0 %v4676_v6  ;;  %3501 = vmatpush3.msra.mxu1 %v4710_v4 }
 0x362   :  { %3459 = vmatprep.subr.mxu0 %v3697_v0  ;;  %3503 = vmatmul.mubr.f32.vlgmr.msra.gmra.mxu1 %v2008_v18 }
 0x363   :  { %3540 = vmatprep.subr.mxu1 %v3697_v0  ;;  %3460 = vmatpush3.msra.mxu0 %v4691_v41 }
 0x364   :  { %3541 = vmatpush3.msra.mxu1 %v4548_v46  ;;  %3461 = vmatprep.subr.mxu0 %v3697_v0  ;;  %v4944_v46 = vand.u32 4294901760, %v4691_v41 }
 0x365   :  { %3542 = vmatprep.subr.mxu1 %v3697_v0  ;;  %3462 = vmatpush3.msra.mxu0 %v4698_v7 }
 0x366   :  { %3543 = vmatpush3.msra.mxu1 %v4553_v58  ;;  %3463 = vmatprep.subr.mxu0 %v3697_v0  ;;  %v4946_v58 = vand.u32 4294901760, %v4708_v53 }
 0x367   :  { %3544 = vmatprep.subr.mxu1 %v3697_v0  ;;  %3464 = vmatpush3.msra.mxu0 %v4708_v53 }
 0x368   :  { %3545 = vmatpush3.msra.mxu1 %v4556_v9  ;;  %3465 = vmatprep.subr.mxu0 %v3697_v0  ;;  %v4947_v9 = vand.u32 4294901760, %v4723_v47 }
 0x369   :  { %3546 = vmatprep.subr.mxu1 %v3697_v0  ;;  %3466 = vmatpush3.msra.mxu0 %v4723_v47 }
 0x36a   :  { %3467 = vmatprep.mubr.msk.f32.mxu0 %vm3698_vm0, %v3697_v0  ;;  %3547 = vmatpush3.msra.mxu1 %v4558_v11 }
 0x36b   :  { %3468 = vmatmul.mubr.f32.vlgmr.msra.gmra.mxu0 %v4746_v31  ;;  %3505 = vmatprep.subr.mxu0 %v3697_v0 }
 0x36c   :  { %3548 = vmatprep.subr.mxu1 %v3697_v0  ;;  %3506 = vmatpush3.msra.mxu0 %v2019_v24 }
 0x36d   :  { %3549 = vmatpush3.msra.mxu1 %v4560_v13  ;;  %3507 = vmatprep.subr.mxu0 %v3697_v0 }
 0x36e   :  { %3550 = vmatprep.subr.mxu1 %v3697_v0  ;;  %3508 = vmatpush3.msra.mxu0 %v2026_v39 }
 0x36f   :  { %3551 = vmatpush3.msra.mxu1 %v4568_v48  ;;  %3509 = vmatprep.subr.mxu0 %v3697_v0 }
 0x370   :  { %3552 = vmatprep.subr.mxu1 %v3697_v0  ;;  %3510 = vmatpush3.msra.mxu0 %v2033_v26 }
 0x371   :  { %3553 = vmatpush3.msra.mxu1 %v4570_v56  ;;  %3511 = vmatprep.subr.mxu0 %v3697_v0 }
 0x372   :  { %3554 = vmatprep.subr.mxu1 %v3697_v0  ;;  %3512 = vmatpush3.msra.mxu0 %v2040_v27 }
 0x373   :  { %3555 = vmatpush3.msra.mxu1 %v4582_v22  ;;  %3513 = vmatprep.subr.mxu0 %v3697_v0 }
 0x374   :  { %3556 = vmatprep.subr.mxu1 %v3697_v0  ;;  %3514 = vmatpush3.msra.mxu0 %v2047_v29 }
 0x375   :  { %3557 = vmatpush3.msra.mxu1 %v4637_v35  ;;  %3515 = vmatprep.subr.mxu0 %v3697_v0 }
 0x376   :  { %3558 = vmatprep.subr.mxu1 %v3697_v0  ;;  %3516 = vmatpush3.msra.mxu0 %v2054_v42 }
 0x377   :  { %3559 = vmatpush3.msra.mxu1 %v4645_v34  ;;  %3517 = vmatprep.subr.mxu0 %v3697_v0 }
 0x378   :  { %3560 = vmatprep.subr.mxu1 %v3697_v0  ;;  %3518 = vmatpush3.msra.mxu0 %v2061_v62 }
 0x379   :  { %3561 = vmatpush3.msra.mxu1 %v4654_v50  ;;  %3519 = vmatprep.subr.mxu0 %v3697_v0 }
 0x37a   :  { %3562 = vmatprep.subr.mxu1 %v3697_v0  ;;  %3520 = vmatpush3.msra.mxu0 %v2068_v30 }
 0x37b   :  { %3563 = vmatpush3.msra.mxu1 %v4666_v37  ;;  %3521 = vmatprep.subr.mxu0 %v3697_v0 }
 0x37c   :  { %3564 = vmatprep.subr.mxu1 %v3697_v0  ;;  %3522 = vmatpush3.msra.mxu0 %v2075_v63 }
 0x37d   :  { %3565 = vmatpush3.msra.mxu1 %v4680_v8  ;;  %3523 = vmatprep.subr.mxu0 %v3697_v0 }
 0x37e   :  { %3566 = vmatprep.subr.mxu1 %v3697_v0  ;;  %3524 = vmatpush3.msra.mxu0 %v2082_v33 }
 0x37f   :  { %3567 = vmatpush3.msra.mxu1 %v4687_v38  ;;  %3525 = vmatprep.subr.mxu0 %v3697_v0 }
 0x380   :  { %3568 = vmatprep.subr.mxu1 %v3697_v0  ;;  %3526 = vmatpush3.msra.mxu0 %v2089_v61 }
 0x381   :  { %3569 = vmatpush3.msra.mxu1 %v4700_v3  ;;  %3527 = vmatprep.subr.mxu0 %v3697_v0 }
 0x382   :  { %3570 = vmatprep.subr.mxu1 %v3697_v0  ;;  %3528 = vmatpush3.msra.mxu0 %v2096_v23 }
 0x383   :  { %3571 = vmatpush3.msra.mxu1 %v4710_v4  ;;  %3572 = vmatprep.mubr.msk.f32.mxu1 %vm3698_vm0, %v3697_v0 }
 0x384   :  { %3529 = vmatprep.subr.mxu0 %v3697_v0  ;;  %3573 = vmatmul.mubr.f32.vlgmr.msra.gmra.mxu1 %v4743_v44 }
 0x385   :  { %3530 = vmatpush3.msra.mxu0 %v4944_v46  ;;  %3537 = vmatprep.mubr.msk.f32.mxu0 %vm3698_vm0, %v3697_v0 }
 0x386   :  { %3531 = vmatprep.subr.mxu0 %v3697_v0 }
 0x387   :  { %3532 = vmatpush3.msra.mxu0 %v4945_v55 }
 0x388   :  { %3533 = vmatprep.subr.mxu0 %v3697_v0 }
 0x389   :  { %3534 = vmatpush3.msra.mxu0 %v4946_v58 }
 0x38a   :  { %3535 = vmatprep.subr.mxu0 %v3697_v0 }
 0x38b   :  { %3536 = vmatpush3.msra.mxu0 %v4947_v9 }
 0x38c   :  { %3538 = vmatmul.mubr.f32.vlgmr.msra.gmra.mxu0 %v4743_v44 }
 0x402   :  { %v2163_v11 = vpop.f32.mrf.mxu1 }
 0x404   :  { %v3434_v13 = vpop.f32.mrf.mxu1 }
 0x40a   :  { %v2012_v24 = vpop.f32.mrf.mxu0 }
 0x40b   :  { %v2013_v22 = vadd.f32 %v2578_v10, %v2012_v24 }
 0x40c   :  { %v3399_v25 = vpop.f32.mrf.mxu0 }
 0x40d   :  { %v2164_v0 = vadd.f32 %v2163_v11, %v2013_v22 }
 0x422   :  { %v2356_v48 = vpop.f32.mrf.mxu1 }
 0x424   :  { %v3504_v56 = vpop.f32.mrf.mxu1 }
 0x42b   :  { %v2267_v5 = vpop.f32.mrf.mxu0 }
 0x42c   :  { %v2268_v40 = vadd.f32 %v2267_v5, %v2164_v0 }
 0x42d   :  { %v3469_v52 = vpop.f32.mrf.mxu0 }
 0x42e   :  { %v2357_v26 = vadd.f32 %v2356_v48, %v2268_v40 }
 0x444   :  { %v2562_v39 = vpop.f32.mrf.mxu1 }
 0x446   :  { %v3574_v59 = vpop.f32.mrf.mxu1 }
 0x44c   :  { %v2475_v27 = vpop.f32.mrf.mxu0 }
 0x44d   :  { %v2476_v29 = vadd.f32 %v2475_v27, %v2357_v26 }
 0x44e   :  { %v3539_v42 = vpop.f32.mrf.mxu0 }
 0x44f   :  { %v2563_v12 = vadd.f32 %v2562_v39, %v2476_v29 }
 0x451   :  { %2567 = vst.msk [vmem:[%s4919_s9] sm:$0xff] %vm2566_vm2, %v2563_v12 }
 0x452   :  { %2572 = vsyncpa [#allocation3], 1 }
 0x453   :  { %2573 = vsyncpa [#allocation5], 1 }
 0x454   :  { %2574 = vsyncpa [#allocation8], 1 }

</bundles_post_ra>
